<compile_context>
chip_gen: v5e
topology: v5e:2x2
jax: 0.10.0
libtpu: 0.0.40
codegen_flags: <defaults>
</compile_context>

<pallas_src>
import functools

import jax
import jax.numpy as jnp
from jax import lax
from jax.experimental import pallas as pl
from jax.experimental.pallas import tpu as pltpu


def encoder_kernel(p1_ref, w1_ref, b1_ref, w2_ref, b2_ref, w3_ref, b3_ref,
                   w4_ref, b4_ref, out_ref, patch_ref, *, ow1, r1, group):
    """One grid step = `group` images, concatenated along the flat spatial axis.

    p1_ref   : (1, 9*Cin, R) bf16  conv1 im2col patches (raw pixels; norm folded into w1/b1)
    w1_ref   : (C, 9*Cin)    bf16  conv1 weights, K ordered (ky, kx, cin)
    w2..w4   : (C, 9*C)      bf16
    b1..b4   : (C, 1)        f32
    out_ref  : (group, C, r1) f32  channel-major per image (== NCHW flatten order)
    patch_ref: (9*C, R)      bf16  VMEM scratch for the in-kernel im2col
    R = group * r1 ; the flat spatial grid has row stride ow1.
    """
    chan = out_ref.shape[1]            # 32
    R = p1_ref.shape[-1]

    # ---- conv1: single MXU dot, K = 9*Cin (normalisation already folded in) ----
    h = jnp.dot(w1_ref[...], p1_ref[0], preferred_element_type=jnp.float32)
    h = jnp.maximum(h + b1_ref[...], 0.0)                     # (C, R) f32

    # ---- conv2..conv4: im2col (9 shifted copies stacked on K) + one dot each ----
    # Columns >= R - s of patch row-block k are never (re)written; they only feed
    # garbage output columns which valid outputs never read (dots are column-local)
    # and which the wrapper crops, so the scratch needs no initialisation.
    for w_ref, b_ref in ((w2_ref, b2_ref), (w3_ref, b3_ref), (w4_ref, b4_ref)):
        for k in range(9):
            ky, kx = divmod(k, 3)
            s = ky * ow1 + kx
            if s == 0:
                patch_ref[0:chan, :] = h.astype(jnp.bfloat16)
            else:
                shifted = lax.slice(h, (0, s), (chan, R))       # (C, R - s)
                patch_ref[k * chan:(k + 1) * chan, 0:R - s] = shifted.astype(
                    jnp.bfloat16)
        h = jnp.dot(w_ref[...], patch_ref[...],
                    preferred_element_type=jnp.float32)        # (C, R) f32
        h = jnp.maximum(h + b_ref[...], 0.0)

    # ---- store each image's (C, oh1*ow1) slab (lane-dense) ----
    for g in range(group):
        out_ref[g] = lax.slice(h, (0, g * r1), (chan, (g + 1) * r1))


def _pick_group(batch, per_image_vmem_bytes, budget_bytes=10 * 1024 * 1024):
    """Images per grid step: amortise per-step overhead, keep grid >= 2 (v7x),
    stay under a conservative VMEM budget (v7x has only 64 MiB physical)."""
    for g in (8, 4, 2):
        if batch % g == 0 and batch // g >= 2 and g * per_image_vmem_bytes <= budget_bytes:
            return g
    return 1


@jax.jit
def encoder_forward(obs, params):
    """obs: (B, Cin, H, W) float pixels in [0, 255] (NCHW, like the PyTorch module).
    Returns (B, 32*oh4*ow4) flattened in NCHW order == Encoder.forward."""
    B, Cin, H, W = obs.shape
    C = params["w1"].shape[-1]                      # 32 channels per conv layer
    oh1, ow1 = (H - 3) // 2 + 1, (W - 3) // 2 + 1   # stride-2 VALID conv
    oh4, ow4 = oh1 - 6, ow1 - 6                     # three more 3x3 VALID convs
    assert oh4 >= 1 and ow4 >= 1, "spatial dims too small for 4 conv layers"
    r1 = oh1 * ow1
    k1 = 9 * Cin

    # rough per-image VMEM bytes: input (x2 buf) + output (x2 buf) + patch scratch + live h
    per_img = r1 * (k1 * 2 * 2 + C * 4 * 2 + 9 * C * 2 + C * 4 * 4)
    G = _pick_group(B, per_img)
    R = G * r1

    # ---- conv1 im2col in the wrapper (pure layout): channel-major (9*Cin, G*r1) ----
    obs_f = obs.astype(jnp.float32)
    cols = []
    for ky in range(3):
        for kx in range(3):
            sl = obs_f[:, :, ky:ky + 2 * oh1 - 1:2, kx:kx + 2 * ow1 - 1:2]
            cols.append(sl.reshape(B, Cin, r1))
    p1 = jnp.concatenate(cols, axis=1)                         # (B, 9*Cin, r1), (ky,kx,cin)
    p1 = (p1.reshape(B // G, G, k1, r1)
            .transpose(0, 2, 1, 3)
            .reshape(B // G, k1, R)
            .astype(jnp.bfloat16))          # integer pixels 0..255 are exact in bf16

    # ---- fold obs/255 - 0.5 into conv1; pre-transpose weights to (Cout, K); bf16 ----
    w1 = params["w1"]                                          # (3, 3, Cin, C) HWIO
    w1_t = (w1 / 255.0).reshape(k1, C).T.astype(jnp.bfloat16)  # (C, 9*Cin)
    b1_t = (params["b1"].reshape(C)
            - 0.5 * jnp.sum(w1, axis=(0, 1, 2))).reshape(C, 1).astype(jnp.float32)
    weight_args = [w1_t, b1_t]
    for i in (2, 3, 4):
        w = params[f"w{i}"]                                    # (3, 3, C, C)
        weight_args.append(w.reshape(9 * C, C).T.astype(jnp.bfloat16))   # (C, 288)
        weight_args.append(params[f"b{i}"].reshape(C, 1).astype(jnp.float32))

    in_specs = [pl.BlockSpec((1, k1, R), lambda i: (i, 0, 0))]
    # constant index_map -> weights/biases are DMA'd once and stay resident in VMEM
    in_specs += [pl.BlockSpec(a.shape, lambda i: (0, 0)) for a in weight_args]

    flops = 2 * B * r1 * C * (k1 + 3 * 9 * C)
    bytes_accessed = (p1.size * 2
                      + sum(a.size * a.dtype.itemsize for a in weight_args)
                      + B * C * r1 * 4)

    out = pl.pallas_call(
        functools.partial(encoder_kernel, ow1=ow1, r1=r1, group=G),
        grid=(B // G,),
        in_specs=in_specs,
        out_specs=pl.BlockSpec((G, C, r1), lambda i: (i, 0, 0)),
        out_shape=jax.ShapeDtypeStruct((B, C, r1), jnp.float32),
        scratch_shapes=[pltpu.VMEM((9 * C, R), jnp.bfloat16)],
        compiler_params=pltpu.CompilerParams(
            dimension_semantics=("parallel",),
            vmem_limit_bytes=32 * 1024 * 1024),
        cost_estimate=pl.CostEstimate(flops=int(flops), transcendentals=0,
                                      bytes_accessed=int(bytes_accessed)),
    )(p1, *weight_args)

    # Channel-major per image already -> just crop the flat stride-ow1 grid to the
    # valid (oh4, ow4) window and flatten.  This IS the PyTorch NCHW flatten order.
    out = out.reshape(B, C, oh1, ow1)[:, :, :oh4, :ow4]
    return out.reshape(B, C * oh4 * ow4)
    # TODO(synk): if the downstream Linear layer were fused here, the crop could be
    # folded into its weight gather instead of a wrapper slice.


def init_params(key, in_channels, channels=32):
    """Conv weights in HWIO layout (== PyTorch (O,I,kH,kW) transposed (2,3,1,0))."""
    keys = jax.random.split(key, 8)
    p, cin = {}, in_channels
    for i in range(1, 5):
        fan_in = 9 * cin
        p[f"w{i}"] = (jax.random.normal(keys[2 * i - 2], (3, 3, cin, channels),
                                        jnp.float32) / jnp.sqrt(fan_in))
        p[f"b{i}"] = jax.random.normal(keys[2 * i - 1], (1, channels),
                                       jnp.float32) * 0.1
        cin = channels
    return p


def reference_encoder(obs, params):
    """Pure-JAX f32 reference matching the PyTorch Encoder.forward."""
    x = obs.astype(jnp.float32) / 255.0 - 0.5
    x = jnp.transpose(x, (0, 2, 3, 1))                  # NHWC
    strides = (2, 1, 1, 1)
    for i in range(1, 5):
        x = lax.conv_general_dilated(
            x, params[f"w{i}"], (strides[i - 1],) * 2, "VALID",
            dimension_numbers=("NHWC", "HWIO", "NHWC"))
        x = jnp.maximum(x + params[f"b{i}"].reshape(1, 1, 1, -1), 0.0)
    x = jnp.transpose(x, (0, 3, 1, 2))                  # NCHW
    return x.reshape(x.shape[0], -1)


if __name__ == "__main__":
    key = jax.random.PRNGKey(0)
    k_obs, k_par = jax.random.split(key)

    # Small shapes consistent with Encoder(obs_shape=(C, H, W)):
    B, C, H, W = 4, 4, 20, 20        # conv maps 20 -> 9 -> 7 -> 5 -> 3, repr = 32*3*3
    obs = jnp.round(jax.random.uniform(k_obs, (B, C, H, W), jnp.float32, 0.0, 255.0))
    params = init_params(k_par, C)

    out = encoder_forward(obs, params)
    jax.block_until_ready(out)

    ref = reference_encoder(obs, params)
    assert out.shape == ref.shape, (out.shape, ref.shape)
    err = float(jnp.max(jnp.abs(out - ref)))
    # bf16 MXU operands with f32 accumulation: expect ~1e-3 abs error vs f32 ref.
    assert err < 3e-2, f"max abs err {err}"
    print("KERNEL_OK")
</pallas_src>

<mosaic_0001>
module attributes {stable_mosaic.version = 11 : i64} {
  func.func @encoder_kernel(%arg0: i32, %arg1: memref<1x36x162xbf16, #tpu.memory_space<vmem>>, %arg2: memref<32x36xbf16, #tpu.memory_space<vmem>>, %arg3: memref<32x1xf32, #tpu.memory_space<vmem>>, %arg4: memref<32x288xbf16, #tpu.memory_space<vmem>>, %arg5: memref<32x1xf32, #tpu.memory_space<vmem>>, %arg6: memref<32x288xbf16, #tpu.memory_space<vmem>>, %arg7: memref<32x1xf32, #tpu.memory_space<vmem>>, %arg8: memref<32x288xbf16, #tpu.memory_space<vmem>>, %arg9: memref<32x1xf32, #tpu.memory_space<vmem>>, %arg10: memref<2x32x81xf32, #tpu.memory_space<vmem>>, %arg11: memref<288x162xbf16, #tpu.memory_space<vmem>>) attributes {dimension_semantics = [#tpu.dimension_semantics<parallel>], iteration_bounds = array<i64: 2>, scalar_prefetch = 0 : i64, scratch_operands = 1 : i64, tpu.core_type = #tpu.core_type<tc>, window_params = [{transform_indices = @transform_0, window_bounds = array<i64: 1, 36, 162>}, {pipeline_mode = #tpu.pipeline_mode<synchronous>, transform_indices = @transform_1, window_bounds = array<i64: 32, 36>}, {pipeline_mode = #tpu.pipeline_mode<synchronous>, transform_indices = @transform_2, window_bounds = array<i64: 32, 1>}, {pipeline_mode = #tpu.pipeline_mode<synchronous>, transform_indices = @transform_3, window_bounds = array<i64: 32, 288>}, {pipeline_mode = #tpu.pipeline_mode<synchronous>, transform_indices = @transform_4, window_bounds = array<i64: 32, 1>}, {pipeline_mode = #tpu.pipeline_mode<synchronous>, transform_indices = @transform_5, window_bounds = array<i64: 32, 288>}, {pipeline_mode = #tpu.pipeline_mode<synchronous>, transform_indices = @transform_6, window_bounds = array<i64: 32, 1>}, {pipeline_mode = #tpu.pipeline_mode<synchronous>, transform_indices = @transform_7, window_bounds = array<i64: 32, 288>}, {pipeline_mode = #tpu.pipeline_mode<synchronous>, transform_indices = @transform_8, window_bounds = array<i64: 32, 1>}, {transform_indices = @transform_9, window_bounds = array<i64: 2, 32, 81>}]} {
    %c0 = arith.constant 0 : index
    %c0_0 = arith.constant 0 : index
    %0 = vector.load %arg2[%c0, %c0_0] : memref<32x36xbf16, #tpu.memory_space<vmem>>, vector<32x36xbf16>
    %c0_1 = arith.constant 0 : index
    %c0_2 = arith.constant 0 : index
    %c0_3 = arith.constant 0 : index
    %1 = vector.load %arg1[%c0_1, %c0_2, %c0_3] : memref<1x36x162xbf16, #tpu.memory_space<vmem>>, vector<1x36x162xbf16>
    %2 = vector.shape_cast %1 : vector<1x36x162xbf16> to vector<36x162xbf16>
    %cst = arith.constant dense<0.000000e+00> : vector<32x162xf32>
    %3 = tpu.matmul %0, %2, %cst {dimension_numbers = #tpu.dot_dimension_numbers<[1], [0], [0], [1], [0, 0, 1, 1], [], []>} : vector<32x36xbf16>, vector<36x162xbf16>, vector<32x162xf32> -> vector<32x162xf32>
    %c0_4 = arith.constant 0 : index
    %c0_5 = arith.constant 0 : index
    %4 = vector.load %arg3[%c0_4, %c0_5] : memref<32x1xf32, #tpu.memory_space<vmem>>, vector<32x1xf32>
    %5 = vector.broadcast %4 : vector<32x1xf32> to vector<32x162xf32>
    %6 = arith.addf %3, %5 : vector<32x162xf32>
    %cst_6 = arith.constant 0.000000e+00 : f32
    %7 = vector.broadcast %cst_6 : f32 to vector<32x162xf32>
    %8 = arith.maximumf %6, %7 : vector<32x162xf32>
    %9 = arith.truncf %8 : vector<32x162xf32> to vector<32x162xbf16>
    %c0_7 = arith.constant 0 : index
    %c0_8 = arith.constant 0 : index
    %10 = vector.load %arg11[%c0_7, %c0_8] : memref<288x162xbf16, #tpu.memory_space<vmem>>, vector<32x162xbf16>
    tpu.vector_store %arg11[%c0_7, %c0_8], %9 {strides = array<i32>} : memref<288x162xbf16, #tpu.memory_space<vmem>>, vector<32x162xbf16>,
    %11 = vector.extract_strided_slice %8 {offsets = [0, 1], sizes = [32, 161], strides = [1, 1]} : vector<32x162xf32> to vector<32x161xf32>
    %12 = arith.truncf %11 : vector<32x161xf32> to vector<32x161xbf16>
    %c32 = arith.constant 32 : index
    %c0_9 = arith.constant 0 : index
    %13 = vector.load %arg11[%c32, %c0_9] : memref<288x162xbf16, #tpu.memory_space<vmem>>, vector<32x161xbf16>
    tpu.vector_store %arg11[%c32, %c0_9], %12 {strides = array<i32>} : memref<288x162xbf16, #tpu.memory_space<vmem>>, vector<32x161xbf16>,
    %14 = vector.extract_strided_slice %8 {offsets = [0, 2], sizes = [32, 160], strides = [1, 1]} : vector<32x162xf32> to vector<32x160xf32>
    %15 = arith.truncf %14 : vector<32x160xf32> to vector<32x160xbf16>
    %c64 = arith.constant 64 : index
    %c0_10 = arith.constant 0 : index
    %16 = vector.load %arg11[%c64, %c0_10] : memref<288x162xbf16, #tpu.memory_space<vmem>>, vector<32x160xbf16>
    tpu.vector_store %arg11[%c64, %c0_10], %15 {strides = array<i32>} : memref<288x162xbf16, #tpu.memory_space<vmem>>, vector<32x160xbf16>,
    %17 = vector.extract_strided_slice %8 {offsets = [0, 9], sizes = [32, 153], strides = [1, 1]} : vector<32x162xf32> to vector<32x153xf32>
    %18 = arith.truncf %17 : vector<32x153xf32> to vector<32x153xbf16>
    %c96 = arith.constant 96 : index
    %c0_11 = arith.constant 0 : index
    %19 = vector.load %arg11[%c96, %c0_11] : memref<288x162xbf16, #tpu.memory_space<vmem>>, vector<32x153xbf16>
    tpu.vector_store %arg11[%c96, %c0_11], %18 {strides = array<i32>} : memref<288x162xbf16, #tpu.memory_space<vmem>>, vector<32x153xbf16>,
    %20 = vector.extract_strided_slice %8 {offsets = [0, 10], sizes = [32, 152], strides = [1, 1]} : vector<32x162xf32> to vector<32x152xf32>
    %21 = arith.truncf %20 : vector<32x152xf32> to vector<32x152xbf16>
    %c128 = arith.constant 128 : index
    %c0_12 = arith.constant 0 : index
    %22 = vector.load %arg11[%c128, %c0_12] : memref<288x162xbf16, #tpu.memory_space<vmem>>, vector<32x152xbf16>
    tpu.vector_store %arg11[%c128, %c0_12], %21 {strides = array<i32>} : memref<288x162xbf16, #tpu.memory_space<vmem>>, vector<32x152xbf16>,
    %23 = vector.extract_strided_slice %8 {offsets = [0, 11], sizes = [32, 151], strides = [1, 1]} : vector<32x162xf32> to vector<32x151xf32>
    %24 = arith.truncf %23 : vector<32x151xf32> to vector<32x151xbf16>
    %c160 = arith.constant 160 : index
    %c0_13 = arith.constant 0 : index
    %25 = vector.load %arg11[%c160, %c0_13] : memref<288x162xbf16, #tpu.memory_space<vmem>>, vector<32x151xbf16>
    tpu.vector_store %arg11[%c160, %c0_13], %24 {strides = array<i32>} : memref<288x162xbf16, #tpu.memory_space<vmem>>, vector<32x151xbf16>,
    %26 = vector.extract_strided_slice %8 {offsets = [0, 18], sizes = [32, 144], strides = [1, 1]} : vector<32x162xf32> to vector<32x144xf32>
    %27 = arith.truncf %26 : vector<32x144xf32> to vector<32x144xbf16>
    %c192 = arith.constant 192 : index
    %c0_14 = arith.constant 0 : index
    %28 = vector.load %arg11[%c192, %c0_14] : memref<288x162xbf16, #tpu.memory_space<vmem>>, vector<32x144xbf16>
    tpu.vector_store %arg11[%c192, %c0_14], %27 {strides = array<i32>} : memref<288x162xbf16, #tpu.memory_space<vmem>>, vector<32x144xbf16>,
    %29 = vector.extract_strided_slice %8 {offsets = [0, 19], sizes = [32, 143], strides = [1, 1]} : vector<32x162xf32> to vector<32x143xf32>
    %30 = arith.truncf %29 : vector<32x143xf32> to vector<32x143xbf16>
    %c224 = arith.constant 224 : index
    %c0_15 = arith.constant 0 : index
    %31 = vector.load %arg11[%c224, %c0_15] : memref<288x162xbf16, #tpu.memory_space<vmem>>, vector<32x143xbf16>
    tpu.vector_store %arg11[%c224, %c0_15], %30 {strides = array<i32>} : memref<288x162xbf16, #tpu.memory_space<vmem>>, vector<32x143xbf16>,
    %32 = vector.extract_strided_slice %8 {offsets = [0, 20], sizes = [32, 142], strides = [1, 1]} : vector<32x162xf32> to vector<32x142xf32>
    %33 = arith.truncf %32 : vector<32x142xf32> to vector<32x142xbf16>
    %c256 = arith.constant 256 : index
    %c0_16 = arith.constant 0 : index
    %34 = vector.load %arg11[%c256, %c0_16] : memref<288x162xbf16, #tpu.memory_space<vmem>>, vector<32x142xbf16>
    tpu.vector_store %arg11[%c256, %c0_16], %33 {strides = array<i32>} : memref<288x162xbf16, #tpu.memory_space<vmem>>, vector<32x142xbf16>,
    %c0_17 = arith.constant 0 : index
    %c0_18 = arith.constant 0 : index
    %35 = vector.load %arg4[%c0_17, %c0_18] : memref<32x288xbf16, #tpu.memory_space<vmem>>, vector<32x288xbf16>
    %c0_19 = arith.constant 0 : index
    %c0_20 = arith.constant 0 : index
    %36 = vector.load %arg11[%c0_19, %c0_20] : memref<288x162xbf16, #tpu.memory_space<vmem>>, vector<288x162xbf16>
    %cst_21 = arith.constant dense<0.000000e+00> : vector<32x162xf32>
    %37 = tpu.matmul %35, %36, %cst_21 {dimension_numbers = #tpu.dot_dimension_numbers<[1], [0], [0], [1], [0, 0, 1, 1], [], []>} : vector<32x288xbf16>, vector<288x162xbf16>, vector<32x162xf32> -> vector<32x162xf32>
    %c0_22 = arith.constant 0 : index
    %c0_23 = arith.constant 0 : index
    %38 = vector.load %arg5[%c0_22, %c0_23] : memref<32x1xf32, #tpu.memory_space<vmem>>, vector<32x1xf32>
    %39 = vector.broadcast %38 : vector<32x1xf32> to vector<32x162xf32>
    %40 = arith.addf %37, %39 : vector<32x162xf32>
    %cst_24 = arith.constant 0.000000e+00 : f32
    %41 = vector.broadcast %cst_24 : f32 to vector<32x162xf32>
    %42 = arith.maximumf %40, %41 : vector<32x162xf32>
    %43 = arith.truncf %42 : vector<32x162xf32> to vector<32x162xbf16>
    %c0_25 = arith.constant 0 : index
    %c0_26 = arith.constant 0 : index
    %44 = vector.load %arg11[%c0_25, %c0_26] : memref<288x162xbf16, #tpu.memory_space<vmem>>, vector<32x162xbf16>
    tpu.vector_store %arg11[%c0_25, %c0_26], %43 {strides = array<i32>} : memref<288x162xbf16, #tpu.memory_space<vmem>>, vector<32x162xbf16>,
    %45 = vector.extract_strided_slice %42 {offsets = [0, 1], sizes = [32, 161], strides = [1, 1]} : vector<32x162xf32> to vector<32x161xf32>
    %46 = arith.truncf %45 : vector<32x161xf32> to vector<32x161xbf16>
    %c32_27 = arith.constant 32 : index
    %c0_28 = arith.constant 0 : index
    %47 = vector.load %arg11[%c32_27, %c0_28] : memref<288x162xbf16, #tpu.memory_space<vmem>>, vector<32x161xbf16>
    tpu.vector_store %arg11[%c32_27, %c0_28], %46 {strides = array<i32>} : memref<288x162xbf16, #tpu.memory_space<vmem>>, vector<32x161xbf16>,
    %48 = vector.extract_strided_slice %42 {offsets = [0, 2], sizes = [32, 160], strides = [1, 1]} : vector<32x162xf32> to vector<32x160xf32>
    %49 = arith.truncf %48 : vector<32x160xf32> to vector<32x160xbf16>
    %c64_29 = arith.constant 64 : index
    %c0_30 = arith.constant 0 : index
    %50 = vector.load %arg11[%c64_29, %c0_30] : memref<288x162xbf16, #tpu.memory_space<vmem>>, vector<32x160xbf16>
    tpu.vector_store %arg11[%c64_29, %c0_30], %49 {strides = array<i32>} : memref<288x162xbf16, #tpu.memory_space<vmem>>, vector<32x160xbf16>,
    %51 = vector.extract_strided_slice %42 {offsets = [0, 9], sizes = [32, 153], strides = [1, 1]} : vector<32x162xf32> to vector<32x153xf32>
    %52 = arith.truncf %51 : vector<32x153xf32> to vector<32x153xbf16>
    %c96_31 = arith.constant 96 : index
    %c0_32 = arith.constant 0 : index
    %53 = vector.load %arg11[%c96_31, %c0_32] : memref<288x162xbf16, #tpu.memory_space<vmem>>, vector<32x153xbf16>
    tpu.vector_store %arg11[%c96_31, %c0_32], %52 {strides = array<i32>} : memref<288x162xbf16, #tpu.memory_space<vmem>>, vector<32x153xbf16>,
    %54 = vector.extract_strided_slice %42 {offsets = [0, 10], sizes = [32, 152], strides = [1, 1]} : vector<32x162xf32> to vector<32x152xf32>
    %55 = arith.truncf %54 : vector<32x152xf32> to vector<32x152xbf16>
    %c128_33 = arith.constant 128 : index
    %c0_34 = arith.constant 0 : index
    %56 = vector.load %arg11[%c128_33, %c0_34] : memref<288x162xbf16, #tpu.memory_space<vmem>>, vector<32x152xbf16>
    tpu.vector_store %arg11[%c128_33, %c0_34], %55 {strides = array<i32>} : memref<288x162xbf16, #tpu.memory_space<vmem>>, vector<32x152xbf16>,
    %57 = vector.extract_strided_slice %42 {offsets = [0, 11], sizes = [32, 151], strides = [1, 1]} : vector<32x162xf32> to vector<32x151xf32>
    %58 = arith.truncf %57 : vector<32x151xf32> to vector<32x151xbf16>
    %c160_35 = arith.constant 160 : index
    %c0_36 = arith.constant 0 : index
    %59 = vector.load %arg11[%c160_35, %c0_36] : memref<288x162xbf16, #tpu.memory_space<vmem>>, vector<32x151xbf16>
    tpu.vector_store %arg11[%c160_35, %c0_36], %58 {strides = array<i32>} : memref<288x162xbf16, #tpu.memory_space<vmem>>, vector<32x151xbf16>,
    %60 = vector.extract_strided_slice %42 {offsets = [0, 18], sizes = [32, 144], strides = [1, 1]} : vector<32x162xf32> to vector<32x144xf32>
    %61 = arith.truncf %60 : vector<32x144xf32> to vector<32x144xbf16>
    %c192_37 = arith.constant 192 : index
    %c0_38 = arith.constant 0 : index
    %62 = vector.load %arg11[%c192_37, %c0_38] : memref<288x162xbf16, #tpu.memory_space<vmem>>, vector<32x144xbf16>
    tpu.vector_store %arg11[%c192_37, %c0_38], %61 {strides = array<i32>} : memref<288x162xbf16, #tpu.memory_space<vmem>>, vector<32x144xbf16>,
    %63 = vector.extract_strided_slice %42 {offsets = [0, 19], sizes = [32, 143], strides = [1, 1]} : vector<32x162xf32> to vector<32x143xf32>
    %64 = arith.truncf %63 : vector<32x143xf32> to vector<32x143xbf16>
    %c224_39 = arith.constant 224 : index
    %c0_40 = arith.constant 0 : index
    %65 = vector.load %arg11[%c224_39, %c0_40] : memref<288x162xbf16, #tpu.memory_space<vmem>>, vector<32x143xbf16>
    tpu.vector_store %arg11[%c224_39, %c0_40], %64 {strides = array<i32>} : memref<288x162xbf16, #tpu.memory_space<vmem>>, vector<32x143xbf16>,
    %66 = vector.extract_strided_slice %42 {offsets = [0, 20], sizes = [32, 142], strides = [1, 1]} : vector<32x162xf32> to vector<32x142xf32>
    %67 = arith.truncf %66 : vector<32x142xf32> to vector<32x142xbf16>
    %c256_41 = arith.constant 256 : index
    %c0_42 = arith.constant 0 : index
    %68 = vector.load %arg11[%c256_41, %c0_42] : memref<288x162xbf16, #tpu.memory_space<vmem>>, vector<32x142xbf16>
    tpu.vector_store %arg11[%c256_41, %c0_42], %67 {strides = array<i32>} : memref<288x162xbf16, #tpu.memory_space<vmem>>, vector<32x142xbf16>,
    %c0_43 = arith.constant 0 : index
    %c0_44 = arith.constant 0 : index
    %69 = vector.load %arg6[%c0_43, %c0_44] : memref<32x288xbf16, #tpu.memory_space<vmem>>, vector<32x288xbf16>
    %c0_45 = arith.constant 0 : index
    %c0_46 = arith.constant 0 : index
    %70 = vector.load %arg11[%c0_45, %c0_46] : memref<288x162xbf16, #tpu.memory_space<vmem>>, vector<288x162xbf16>
    %cst_47 = arith.constant dense<0.000000e+00> : vector<32x162xf32>
    %71 = tpu.matmul %69, %70, %cst_47 {dimension_numbers = #tpu.dot_dimension_numbers<[1], [0], [0], [1], [0, 0, 1, 1], [], []>} : vector<32x288xbf16>, vector<288x162xbf16>, vector<32x162xf32> -> vector<32x162xf32>
    %c0_48 = arith.constant 0 : index
    %c0_49 = arith.constant 0 : index
    %72 = vector.load %arg7[%c0_48, %c0_49] : memref<32x1xf32, #tpu.memory_space<vmem>>, vector<32x1xf32>
    %73 = vector.broadcast %72 : vector<32x1xf32> to vector<32x162xf32>
    %74 = arith.addf %71, %73 : vector<32x162xf32>
    %cst_50 = arith.constant 0.000000e+00 : f32
    %75 = vector.broadcast %cst_50 : f32 to vector<32x162xf32>
    %76 = arith.maximumf %74, %75 : vector<32x162xf32>
    %77 = arith.truncf %76 : vector<32x162xf32> to vector<32x162xbf16>
    %c0_51 = arith.constant 0 : index
    %c0_52 = arith.constant 0 : index
    %78 = vector.load %arg11[%c0_51, %c0_52] : memref<288x162xbf16, #tpu.memory_space<vmem>>, vector<32x162xbf16>
    tpu.vector_store %arg11[%c0_51, %c0_52], %77 {strides = array<i32>} : memref<288x162xbf16, #tpu.memory_space<vmem>>, vector<32x162xbf16>,
    %79 = vector.extract_strided_slice %76 {offsets = [0, 1], sizes = [32, 161], strides = [1, 1]} : vector<32x162xf32> to vector<32x161xf32>
    %80 = arith.truncf %79 : vector<32x161xf32> to vector<32x161xbf16>
    %c32_53 = arith.constant 32 : index
    %c0_54 = arith.constant 0 : index
    %81 = vector.load %arg11[%c32_53, %c0_54] : memref<288x162xbf16, #tpu.memory_space<vmem>>, vector<32x161xbf16>
    tpu.vector_store %arg11[%c32_53, %c0_54], %80 {strides = array<i32>} : memref<288x162xbf16, #tpu.memory_space<vmem>>, vector<32x161xbf16>,
    %82 = vector.extract_strided_slice %76 {offsets = [0, 2], sizes = [32, 160], strides = [1, 1]} : vector<32x162xf32> to vector<32x160xf32>
    %83 = arith.truncf %82 : vector<32x160xf32> to vector<32x160xbf16>
    %c64_55 = arith.constant 64 : index
    %c0_56 = arith.constant 0 : index
    %84 = vector.load %arg11[%c64_55, %c0_56] : memref<288x162xbf16, #tpu.memory_space<vmem>>, vector<32x160xbf16>
    tpu.vector_store %arg11[%c64_55, %c0_56], %83 {strides = array<i32>} : memref<288x162xbf16, #tpu.memory_space<vmem>>, vector<32x160xbf16>,
    %85 = vector.extract_strided_slice %76 {offsets = [0, 9], sizes = [32, 153], strides = [1, 1]} : vector<32x162xf32> to vector<32x153xf32>
    %86 = arith.truncf %85 : vector<32x153xf32> to vector<32x153xbf16>
    %c96_57 = arith.constant 96 : index
    %c0_58 = arith.constant 0 : index
    %87 = vector.load %arg11[%c96_57, %c0_58] : memref<288x162xbf16, #tpu.memory_space<vmem>>, vector<32x153xbf16>
    tpu.vector_store %arg11[%c96_57, %c0_58], %86 {strides = array<i32>} : memref<288x162xbf16, #tpu.memory_space<vmem>>, vector<32x153xbf16>,
    %88 = vector.extract_strided_slice %76 {offsets = [0, 10], sizes = [32, 152], strides = [1, 1]} : vector<32x162xf32> to vector<32x152xf32>
    %89 = arith.truncf %88 : vector<32x152xf32> to vector<32x152xbf16>
    %c128_59 = arith.constant 128 : index
    %c0_60 = arith.constant 0 : index
    %90 = vector.load %arg11[%c128_59, %c0_60] : memref<288x162xbf16, #tpu.memory_space<vmem>>, vector<32x152xbf16>
    tpu.vector_store %arg11[%c128_59, %c0_60], %89 {strides = array<i32>} : memref<288x162xbf16, #tpu.memory_space<vmem>>, vector<32x152xbf16>,
    %91 = vector.extract_strided_slice %76 {offsets = [0, 11], sizes = [32, 151], strides = [1, 1]} : vector<32x162xf32> to vector<32x151xf32>
    %92 = arith.truncf %91 : vector<32x151xf32> to vector<32x151xbf16>
    %c160_61 = arith.constant 160 : index
    %c0_62 = arith.constant 0 : index
    %93 = vector.load %arg11[%c160_61, %c0_62] : memref<288x162xbf16, #tpu.memory_space<vmem>>, vector<32x151xbf16>
    tpu.vector_store %arg11[%c160_61, %c0_62], %92 {strides = array<i32>} : memref<288x162xbf16, #tpu.memory_space<vmem>>, vector<32x151xbf16>,
    %94 = vector.extract_strided_slice %76 {offsets = [0, 18], sizes = [32, 144], strides = [1, 1]} : vector<32x162xf32> to vector<32x144xf32>
    %95 = arith.truncf %94 : vector<32x144xf32> to vector<32x144xbf16>
    %c192_63 = arith.constant 192 : index
    %c0_64 = arith.constant 0 : index
    %96 = vector.load %arg11[%c192_63, %c0_64] : memref<288x162xbf16, #tpu.memory_space<vmem>>, vector<32x144xbf16>
    tpu.vector_store %arg11[%c192_63, %c0_64], %95 {strides = array<i32>} : memref<288x162xbf16, #tpu.memory_space<vmem>>, vector<32x144xbf16>,
    %97 = vector.extract_strided_slice %76 {offsets = [0, 19], sizes = [32, 143], strides = [1, 1]} : vector<32x162xf32> to vector<32x143xf32>
    %98 = arith.truncf %97 : vector<32x143xf32> to vector<32x143xbf16>
    %c224_65 = arith.constant 224 : index
    %c0_66 = arith.constant 0 : index
    %99 = vector.load %arg11[%c224_65, %c0_66] : memref<288x162xbf16, #tpu.memory_space<vmem>>, vector<32x143xbf16>
    tpu.vector_store %arg11[%c224_65, %c0_66], %98 {strides = array<i32>} : memref<288x162xbf16, #tpu.memory_space<vmem>>, vector<32x143xbf16>,
    %100 = vector.extract_strided_slice %76 {offsets = [0, 20], sizes = [32, 142], strides = [1, 1]} : vector<32x162xf32> to vector<32x142xf32>
    %101 = arith.truncf %100 : vector<32x142xf32> to vector<32x142xbf16>
    %c256_67 = arith.constant 256 : index
    %c0_68 = arith.constant 0 : index
    %102 = vector.load %arg11[%c256_67, %c0_68] : memref<288x162xbf16, #tpu.memory_space<vmem>>, vector<32x142xbf16>
    tpu.vector_store %arg11[%c256_67, %c0_68], %101 {strides = array<i32>} : memref<288x162xbf16, #tpu.memory_space<vmem>>, vector<32x142xbf16>,
    %c0_69 = arith.constant 0 : index
    %c0_70 = arith.constant 0 : index
    %103 = vector.load %arg8[%c0_69, %c0_70] : memref<32x288xbf16, #tpu.memory_space<vmem>>, vector<32x288xbf16>
    %c0_71 = arith.constant 0 : index
    %c0_72 = arith.constant 0 : index
    %104 = vector.load %arg11[%c0_71, %c0_72] : memref<288x162xbf16, #tpu.memory_space<vmem>>, vector<288x162xbf16>
    %cst_73 = arith.constant dense<0.000000e+00> : vector<32x162xf32>
    %105 = tpu.matmul %103, %104, %cst_73 {dimension_numbers = #tpu.dot_dimension_numbers<[1], [0], [0], [1], [0, 0, 1, 1], [], []>} : vector<32x288xbf16>, vector<288x162xbf16>, vector<32x162xf32> -> vector<32x162xf32>
    %c0_74 = arith.constant 0 : index
    %c0_75 = arith.constant 0 : index
    %106 = vector.load %arg9[%c0_74, %c0_75] : memref<32x1xf32, #tpu.memory_space<vmem>>, vector<32x1xf32>
    %107 = vector.broadcast %106 : vector<32x1xf32> to vector<32x162xf32>
    %108 = arith.addf %105, %107 : vector<32x162xf32>
    %cst_76 = arith.constant 0.000000e+00 : f32
    %109 = vector.broadcast %cst_76 : f32 to vector<32x162xf32>
    %110 = arith.maximumf %108, %109 : vector<32x162xf32>
    %111 = vector.extract_strided_slice %110 {offsets = [0, 0], sizes = [32, 81], strides = [1, 1]} : vector<32x162xf32> to vector<32x81xf32>
    %c0_77 = arith.constant 0 : index
    %c0_78 = arith.constant 0 : index
    %c0_79 = arith.constant 0 : index
    %112 = vector.load %arg10[%c0_77, %c0_78, %c0_79] : memref<2x32x81xf32, #tpu.memory_space<vmem>>, vector<1x32x81xf32>
    %113 = vector.shape_cast %112 : vector<1x32x81xf32> to vector<32x81xf32>
    %114 = vector.shape_cast %111 : vector<32x81xf32> to vector<1x32x81xf32>
    tpu.vector_store %arg10[%c0_77, %c0_78, %c0_79], %114 {strides = array<i32>} : memref<2x32x81xf32, #tpu.memory_space<vmem>>, vector<1x32x81xf32>,
    %115 = vector.extract_strided_slice %110 {offsets = [0, 81], sizes = [32, 81], strides = [1, 1]} : vector<32x162xf32> to vector<32x81xf32>
    %c1 = arith.constant 1 : index
    %c0_80 = arith.constant 0 : index
    %c0_81 = arith.constant 0 : index
    %116 = vector.load %arg10[%c1, %c0_80, %c0_81] : memref<2x32x81xf32, #tpu.memory_space<vmem>>, vector<1x32x81xf32>
    %117 = vector.shape_cast %116 : vector<1x32x81xf32> to vector<32x81xf32>
    %118 = vector.shape_cast %115 : vector<32x81xf32> to vector<1x32x81xf32>
    tpu.vector_store %arg10[%c1, %c0_80, %c0_81], %118 {strides = array<i32>} : memref<2x32x81xf32, #tpu.memory_space<vmem>>, vector<1x32x81xf32>,
    return
  }
  func.func @transform_0(%arg0: i32) -> (i32, i32, i32) {
    %c0_i32 = arith.constant 0 : i32
    %c0_i32_0 = arith.constant 0 : i32
    %c0_i32_1 = arith.constant 0 : i32
    return %arg0, %c0_i32, %c0_i32_0 : i32, i32, i32
  }
  func.func @transform_1(%arg0: i32) -> (i32, i32) {
    %c0_i32 = arith.constant 0 : i32
    %c0_i32_0 = arith.constant 0 : i32
    %c0_i32_1 = arith.constant 0 : i32
    return %c0_i32, %c0_i32_0 : i32, i32
  }
  func.func @transform_2(%arg0: i32) -> (i32, i32) {
    %c0_i32 = arith.constant 0 : i32
    %c0_i32_0 = arith.constant 0 : i32
    %c0_i32_1 = arith.constant 0 : i32
    return %c0_i32, %c0_i32_0 : i32, i32
  }
  func.func @transform_3(%arg0: i32) -> (i32, i32) {
    %c0_i32 = arith.constant 0 : i32
    %c0_i32_0 = arith.constant 0 : i32
    %c0_i32_1 = arith.constant 0 : i32
    return %c0_i32, %c0_i32_0 : i32, i32
  }
  func.func @transform_4(%arg0: i32) -> (i32, i32) {
    %c0_i32 = arith.constant 0 : i32
    %c0_i32_0 = arith.constant 0 : i32
    %c0_i32_1 = arith.constant 0 : i32
    return %c0_i32, %c0_i32_0 : i32, i32
  }
  func.func @transform_5(%arg0: i32) -> (i32, i32) {
    %c0_i32 = arith.constant 0 : i32
    %c0_i32_0 = arith.constant 0 : i32
    %c0_i32_1 = arith.constant 0 : i32
    return %c0_i32, %c0_i32_0 : i32, i32
  }
  func.func @transform_6(%arg0: i32) -> (i32, i32) {
    %c0_i32 = arith.constant 0 : i32
    %c0_i32_0 = arith.constant 0 : i32
    %c0_i32_1 = arith.constant 0 : i32
    return %c0_i32, %c0_i32_0 : i32, i32
  }
  func.func @transform_7(%arg0: i32) -> (i32, i32) {
    %c0_i32 = arith.constant 0 : i32
    %c0_i32_0 = arith.constant 0 : i32
    %c0_i32_1 = arith.constant 0 : i32
    return %c0_i32, %c0_i32_0 : i32, i32
  }
  func.func @transform_8(%arg0: i32) -> (i32, i32) {
    %c0_i32 = arith.constant 0 : i32
    %c0_i32_0 = arith.constant 0 : i32
    %c0_i32_1 = arith.constant 0 : i32
    return %c0_i32, %c0_i32_0 : i32, i32
  }
  func.func @transform_9(%arg0: i32) -> (i32, i32, i32) {
    %c0_i32 = arith.constant 0 : i32
    %c0_i32_0 = arith.constant 0 : i32
    %c0_i32_1 = arith.constant 0 : i32
    return %arg0, %c0_i32, %c0_i32_0 : i32, i32, i32
  }
}

</mosaic_0001>

<bundles_post_ra>
// kernel: encoder_forward.1
= control target key start
LH: loop header
LB: loop body
LE: loop exit
PB: predicated region body
PF: predicated region fallthrough
CT: control target
= control target key end

     0   :  { %s3216_s30 = smov 0   ;;  %s3932_s0 = inlined_call_operand.vmem [shape: bf16[2,36,162], index: 0, kind: input, shape index: {}]   ;;  %s3933_s1 = inlined_call_operand.vmem [shape: bf16[32,36], index: 1, kind: input, shape index: {}]   ;;  %s3934_s2 = inlined_call_operand.vmem [shape: f32[32,1], index: 2, kind: input, shape index: {}]   ;;  %s3935_s3 = inlined_call_operand.vmem [shape: bf16[32,288], index: 3, kind: input, shape index: {}]   ;;  %s3936_s4 = inlined_call_operand.vmem [shape: f32[32,1], index: 4, kind: input, shape index: {}]   ;;  %s3937_s5 = inlined_call_operand.vmem [shape: bf16[32,288], index: 5, kind: input, shape index: {}]   ;;  %s3938_s6 = inlined_call_operand.vmem [shape: f32[32,1], index: 6, kind: input, shape index: {}]   ;;  %s3939_s7 = inlined_call_operand.vmem [shape: bf16[32,288], index: 7, kind: input, shape index: {}]   ;;  %s3940_s8 = inlined_call_operand.vmem [shape: f32[32,1], index: 8, kind: input, shape index: {}]   ;;  %s3941_s9 = inlined_call_operand.vmem [shape: f32[4,32,81], index: 9, kind: output, shape index: {}]  }
   0x1 LB: > { %s3222_s10 = sadd.s32 4294967295, %s3154_s30   ;;  %p2428_p0 = scmp.ge.s32.totalorder %s3154_s30, 1  ;;  %s3154_s30 = sphi %s3216_s30, %s19_s30  }
   0x2   : > { %p287_p1 = scmp.lt.s32.totalorder %s3154_s30, 3 }
   0x4   : > { %p288_p2 = pnand %p2428_p0, %p287_p1 }
   0x5   : > { %p324_p3 = scmp.lt.s32.totalorder (!%p288_p2), %s3222_s10, 1  ;;  %s3157_s28 = smov (!%p288_p2), 110  }
   0x6   : > { %291 = sbr.rel (%p288_p2) target bundleno = 1409 (0x581), region = 56  ;;  %s3158_s29 = smov (!%p288_p2), 109  }
   0x7   : > { %s3159_s11 = smov (!%p288_p2), 119   ;;  %s3160_s12 = smov (!%p288_p2), 126  }
   0x8   : > { %s3163_s15 = smov (!%p288_p2), 118   ;;  %s3164_s16 = smov (!%p288_p2), 108  }
   0x9   : > { %s2430_s20 = sshll.u32 (!%p288_p2), %s3222_s10, 1 }
   0xa   : > { %p330_p4 = scmp.lt.s32.totalorder (!%p288_p2), %s2430_s20, 3 }
   0xb   : > { %v346_v0 = vld [vmem:[%s3934_s2] sm:$0xff]  ;;  %v3156_v1 = vmov 0   ;;  %s325_s13 = scalar_select %p324_p3, %s3222_s10, 1  ;;  %v347_v3 = vld [vmem:[%s3934_s2 + $0x8] sm:$0xff]  ;;  %vm412_vm0 = vcmask 1041408   ;;  %v348_v12 = vld [vmem:[%s3934_s2 + $0x10] sm:$0xff] }
   0xc   : > { %3146 = vset.pattern.permute.xlu1 %v3156_v1  ;;  %3145 = vset.pattern.permute.xlu0 %v3156_v1  ;;  %v349_v21 = vld [vmem:[%s3934_s2 + $0x18] sm:$0xff]  ;;  %v2984_v24 = vld [vmem:[%s3933_s1] sm:$0xff]  ;;  %vm405_vm1 = vcmask 293888   ;;  %v2985_v25 = vld [vmem:[%s3933_s1 + $0x8] sm:$0xff]  ;;  %vm469_vm2 = vcmask 1043456   ;;  %vm470_vm3 = vcmask 277508  }
   0xd   : > { %352 = vperm.xlu1 %3146, %v346_v0   ;;  %3147 = vset.pattern.permute.xlu2 %v3156_v1  ;;  %s3126_s14 = smul.u32 40, %s325_s13  ;;  %vm3250_vm4 = vmor %vm470_vm3, %vm469_vm2  ;;  %s3161_s13 = smov 117   ;;  %v742_v59 = vld [vmem:[%s3936_s4 + $0x10] sm:$0xff]  ;;  %v743_v60 = vld [vmem:[%s3936_s4 + $0x18] sm:$0xff]  ;;  %vm555_vm5 = vcmask 203780   ;;  %vm546_vm6 = vcmask 973824  }
   0xe   : > { %362 = vperm.xlu0 %3145, %v348_v12   ;;  %v741_v61 = vld [vmem:[%s3936_s4 + $0x8] sm:$0xff]  ;;  %vm3315_vm7 = vmor %vm555_vm5, %vm469_vm2  ;;  %vm663_vm8 = vcmask 121860   ;;  %vm654_vm9 = vcmask 891904   ;;  %vm528_vm11 = vcmask 261124   ;;  %vm3944_vm12 = vcmask 1031168   ;;  %v1961_v33 = vld [vmem:[%s3940_s8] sm:$0xff] }
   0xf   : > { %s328_s17 = scalar_lea.vmem %s3932_s0, %s3126_s14  ;;  %s3162_s14 = smov 127   ;;  %vm3323_vm10 = vmor %vm663_vm8, %vm469_vm2  ;;  %vm636_vm14 = vcmask 130052   ;;  %vm3942_vm15 = vcmask 900096   ;;  %vm600_vm3 = vcmask 957440   ;;  %vm501_vm5 = vcmask 269316  }
  0x10   : > { %v345_v2 = vld [vmem:[%s328_s17 + $0x20] sm:$0x33]  ;;  %v2451_v6 = vld [vmem:[%s328_s17 + $0x10] sm:$0xf]  ;;  %v2989_v7 = vld [vmem:[%s328_s17 + $0x14] sm:$0xf0] }
  0x11   : > { %v393_v4 = vunpack.c.l.b16 %v345_v2  ;;  %v394_v5 = vunpack.c.h.b16 %v345_v2  ;;  %v2988_v10 = vld [vmem:[%s328_s17 + $0x14] sm:$0xf]  ;;  %v2453_v11 = vld [vmem:[%s328_s17 + $0x18] sm:$0xf0]  ;;  %v2452_v15 = vor.u32 %v2989_v7, %v2451_v6  ;;  %v2443_v17 = vld [vmem:[%s328_s17] sm:$0xf] }
  0x12   : > { %v2456_v16 = vor.u32 %v2988_v10, %v2453_v11  ;;  %v2987_v18 = vld [vmem:[%s328_s17 + $0x4] sm:$0xf0]  ;;  %v2986_v19 = vld [vmem:[%s328_s17 + $0x4] sm:$0xf]  ;;  %v2445_v20 = vld [vmem:[%s328_s17 + $0x8] sm:$0xf0] }
  0x13   : > { %v399_v8 = vpack.c.b16 %v393_v4, %v393_v4  ;;  %v400_v9 = vpack.c.b16 %v394_v5, %v394_v5  ;;  %v2444_v22 = vor.u32 %v2987_v18, %v2443_v17  ;;  %v2448_v23 = vor.u32 %v2986_v19, %v2445_v20  ;;  %vm3331_vm13 = vmor %vm528_vm11, %vm469_vm2  ;;  %s4000_s20 = smov (!%p330_p4, %s2430_s20), 3  ;;  %s3165_s10 = smov 47  }
  0x14   : > { %vm3943_vm8 = vcmask 1039360   ;;  %s2983_s21 = sshll.u32 %s4000_s20, 5 }
  0x15   : > { %357 = vperm.xlu1 %3146, %v347_v3   ;;  %v414_v13 = vsel %vm412_vm0, %v399_v8, 0  ;;  %v417_v14 = vsel %vm412_vm0, %v400_v9, 0  ;;  %vm3339_vm0 = vmor %vm636_vm14, %vm469_vm2  ;;  %s3903_s24 = scalar_lea.vmem %s3941_s9, %s2983_s21 }
  0x16   : > { %424 = vmatpush.bf16.msra.mxu0 %v414_v13  ;;  %443 = vmatpush.bf16.msra.mxu1 %v417_v14  ;;  %vm3378_vm14 = vmor %vm501_vm5, %vm469_vm2  ;;  %vm573_vm5 = vcmask 965632  }
  0x17   : > { %367 = vperm.xlu0 %3145, %v349_v21  }
  0x1a   : > { %425 = vmatpush.bf16.msra.mxu0 %v2452_v15  ;;  %444 = vmatpush.bf16.msra.mxu1 %v2456_v16 }
  0x1e   : > { %426 = vmatpush.bf16.msra.mxu0 %v2444_v22  ;;  %445 = vmatpush.bf16.msra.mxu1 %v2448_v23 }
  0x21   : > { %2457 = vmatmul.msk.bf16.vlgmr.msra.gmra.mxu0 %vm405_vm1, %v2984_v24  ;;  %2459 = vmatmul.msk.bf16.vlgmr.msra.gmra.mxu1 %vm405_vm1, %v2984_v24 }
  0x31   : > { %2458 = vmatmul.msk.bf16.gmra.mxu0 %vm405_vm1, %v2985_v25  ;;  %2460 = vmatmul.msk.bf16.gmra.mxu1 %vm405_vm1, %v2985_v25  ;;  %vm609_vm1 = vcmask 187396  }
  0x32   : > { %vm3371_vm11 = vmor %vm609_vm1, %vm469_vm2  ;;  %vm582_vm1 = vcmask 195588  }
  0x7f   : > { %v353_v26 = vpop.permute.xlu1 %352 }
  0x80   : > { %v363_v42 = vpop.permute.xlu0 %362 }
  0x87   : > { %v358_v35 = vpop.permute.xlu1 %357 }
  0x89   : > { %v368_v51 = vpop.permute.xlu0 %367 }
  0x9e   : > { %v428_v27 = vpop.f32.mrf.mxu0  ;;  %v447_v28 = vpop.f32.mrf.mxu1 }
  0x9f   : > { %v429_v29 = vadd.f32 %v428_v27, %v353_v26  ;;  %v448_v30 = vadd.f32 %v447_v28, %v353_v26 }
  0xa1   : > { %v457_v31 = vmax.f32 %v429_v29, 0.0  ;;  %v458_v32 = vmax.f32 %v448_v30, 0.0 }
  0xa3   : > { %v3254_v34 = vpack.c.bf16 %v458_v32, %v457_v31 }
  0xa5   : > { %615 = vrot.lane.b32.xlu0 %v3254_v34, %s3157_s28  ;;  %642 = vrot.lane.b32.xlu1 %v3254_v34, %s3158_s29  ;;  %472 = vst.msk [vmem:[#allocation2] sm:$0xff] %vm3250_vm4, %v3254_v34 }
  0xa6   : > { %534 = vrot.lane.b32.xlu2 %v3254_v34, %s3159_s11  ;;  %v430_v36 = vpop.f32.mrf.mxu0  ;;  %v449_v37 = vpop.f32.mrf.mxu1 }
  0xa7   : > { %v431_v38 = vadd.f32 %v430_v36, %v358_v35  ;;  %v450_v39 = vadd.f32 %v449_v37, %v358_v35 }
  0xa9   : > { %v459_v40 = vmax.f32 %v431_v38, 0.0  ;;  %v460_v41 = vmax.f32 %v450_v39, 0.0 }
  0xab   : > { %v466_v43 = vpack.c.bf16 %v460_v41, %v459_v40 }
  0xad   : > { %536 = vrot.lane.b32.xlu0 %v466_v43, %s3159_s11  ;;  %507 = vrot.lane.b32.xlu1 %v3254_v34, %s3160_s12  ;;  %473 = vst.msk [vmem:[#allocation2 + $0x8] sm:$0xff] %vm3250_vm4, %v466_v43 }
  0xae   : > { %644 = vrot.lane.b32.xlu2 %v466_v43, %s3158_s29  ;;  %v433_v44 = vpop.f32.mrf.mxu0  ;;  %v452_v45 = vpop.f32.mrf.mxu1 }
  0xaf   : > { %v434_v46 = vadd.f32 %v433_v44, %v363_v42  ;;  %v453_v47 = vadd.f32 %v452_v45, %v363_v42 }
  0xb1   : > { %v461_v48 = vmax.f32 %v434_v46, 0.0  ;;  %v462_v49 = vmax.f32 %v453_v47, 0.0 }
  0xb3   : > { %v467_v50 = vpack.c.bf16 %v462_v49, %v461_v48 }
  0xb5   : > { %646 = vrot.lane.b32.xlu0 %v467_v50, %s3158_s29  ;;  %617 = vrot.lane.b32.xlu1 %v466_v43, %s3157_s28  ;;  %474 = vst.msk [vmem:[#allocation2 + $0x10] sm:$0xff] %vm3250_vm4, %v467_v50 }
  0xb6   : > { %509 = vrot.lane.b32.xlu2 %v466_v43, %s3160_s12  ;;  %v435_v52 = vpop.f32.mrf.mxu0  ;;  %v454_v53 = vpop.f32.mrf.mxu1 }
  0xb7   : > { %v436_v54 = vadd.f32 %v435_v52, %v368_v51  ;;  %v455_v55 = vadd.f32 %v454_v53, %v368_v51 }
  0xb9   : > { %v463_v56 = vmax.f32 %v436_v54, 0.0  ;;  %v464_v57 = vmax.f32 %v455_v55, 0.0 }
  0xbb   : > { %v468_v58 = vpack.c.bf16 %v464_v57, %v463_v56 }
  0xbd   : > { %511 = vrot.lane.b32.xlu0 %v467_v50, %s3160_s12  ;;  %592 = vrot.lane.b32.xlu1 %v467_v50, %s3161_s13  ;;  %475 = vst.msk [vmem:[#allocation2 + $0x18] sm:$0xff] %vm3250_vm4, %v468_v58 }
  0xbe   : > { %538 = vrot.lane.b32.xlu2 %v467_v50, %s3159_s11 }
  0xc5   : > { %480 = vrot.lane.b32.xlu0 %v3254_v34, %s3162_s14  ;;  %648 = vrot.lane.b32.xlu1 %v468_v58, %s3158_s29 }
  0xc6   : > { %619 = vrot.lane.b32.xlu2 %v467_v50, %s3157_s28 }
  0xcd   : > { %621 = vrot.lane.b32.xlu0 %v468_v58, %s3157_s28  ;;  %513 = vrot.lane.b32.xlu1 %v468_v58, %s3160_s12 }
  0xce   : > { %540 = vrot.lane.b32.xlu2 %v468_v58, %s3159_s11 }
  0xd5   : > { %486 = vrot.lane.b32.xlu0 %v468_v58, %s3162_s14  ;;  %482 = vrot.lane.b32.xlu1 %v466_v43, %s3162_s14 }
  0xd6   : > { %484 = vrot.lane.b32.xlu2 %v467_v50, %s3162_s14 }
  0xdd   : > { %590 = vrot.lane.b32.xlu0 %v466_v43, %s3161_s13  ;;  %565 = vrot.lane.b32.xlu1 %v467_v50, %s3163_s15 }
  0xde   : > { %588 = vrot.lane.b32.xlu2 %v3254_v34, %s3161_s13 }
  0xe5   : > { %561 = vrot.lane.b32.xlu0 %v3254_v34, %s3163_s15  ;;  %563 = vrot.lane.b32.xlu1 %v466_v43, %s3163_s15 }
  0xe6   : > { %594 = vrot.lane.b32.xlu2 %v468_v58, %s3161_s13 }
  0xed   : > { %675 = vrot.lane.b32.xlu0 %v468_v58, %s3164_s16  ;;  %669 = vrot.lane.b32.xlu1 %v3254_v34, %s3164_s16 }
  0xee   : > { %567 = vrot.lane.b32.xlu2 %v468_v58, %s3163_s15 }
  0xf5   : > { %756 = vperm.xlu0 %3145, %v742_v59   ;;  %761 = vperm.xlu1 %3146, %v743_v60  }
  0xf6   : > { %673 = vrot.lane.b32.xlu2 %v467_v50, %s3164_s16 }
  0xfd   : > { %751 = vperm.xlu0 %3145, %v741_v61  }
  0xfe   : > { %671 = vrot.lane.b32.xlu2 %v466_v43, %s3164_s16 }
 0x100   : > { %v535_v62 = vpop.permute.xlu2 %534 }
 0x101   : > { %v542_v0 = vrot.slane %v535_v62, 4 }
 0x103   : > { %v547_v1 = vsel %vm546_vm6, %v535_v62, %v542_v0 }
 0x104   : > { %557 = vst.msk [vmem:[#allocation2 + $0x60] sm:$0xff] %vm3315_vm7, %v547_v1 }
 0x108   : > { %v645_v2 = vpop.permute.xlu2 %644 }
 0x109   : > { %v651_v4 = vrot.slane %v645_v2, 4 }
 0x10b   : > { %v656_v5 = vsel %vm654_vm9, %v645_v2, %v651_v4  ;;  %v2535_v0 = vld [vmem:[#allocation2 + $0x60] sm:$0xf]  ;;  %v3008_v1 = vld [vmem:[#allocation2 + $0x64] sm:$0xf] }
 0x10c   : > { %666 = vst.msk [vmem:[#allocation2 + $0xe8] sm:$0xff] %vm3323_vm10, %v656_v5 }
 0x110   : > { %v510_v6 = vpop.permute.xlu2 %509 }
 0x111   : > { %v516_v8 = vrot.slane %v510_v6, 4 }
 0x113   : > { %v521_v9 = vsel %vm3944_vm12, %v510_v6, %v516_v8 }
 0x114   : > { %531 = vst.msk [vmem:[#allocation2 + $0x48] sm:$0xff] %vm3331_vm13, %v521_v9 }
 0x117   : > { %v616_v10 = vpop.permute.xlu0 %615  ;;  %v643_v11 = vpop.permute.xlu1 %642 }
 0x118   : > { %v623_v13 = vrot.slane %v616_v10, 4  ;;  %v650_v14 = vrot.slane %v643_v11, 4  ;;  %v539_v15 = vpop.permute.xlu2 %538 }
 0x119   : > { %v544_v16 = vrot.slane %v539_v15, 4 }
 0x11a   : > { %v628_v17 = vsel %vm3942_vm15, %v616_v10, %v623_v13  ;;  %v655_v18 = vsel %vm654_vm9, %v643_v11, %v650_v14 }
 0x11b   : > { %638 = vst.msk [vmem:[#allocation2 + $0xc0] sm:$0xff] %vm3339_vm0, %v628_v17  ;;  %v549_v19 = vsel %vm546_vm6, %v539_v15, %v544_v16 }
 0x11c   : > { %665 = vst.msk [vmem:[#allocation2 + $0xe0] sm:$0xff] %vm3323_vm10, %v655_v18 }
 0x11d   : > { %559 = vst.msk [vmem:[#allocation2 + $0x70] sm:$0xff] %vm3315_vm7, %v549_v19 }
 0x11f   : > { %v537_v20 = vpop.permute.xlu0 %536  ;;  %v508_v21 = vpop.permute.xlu1 %507 }
 0x120   : > { %v543_v22 = vrot.slane %v537_v20, 4  ;;  %v515_v23 = vrot.slane %v508_v21, 4  ;;  %v620_v24 = vpop.permute.xlu2 %619 }
 0x121   : > { %v625_v25 = vrot.slane %v620_v24, 4 }
 0x122   : > { %v548_v26 = vsel %vm546_vm6, %v537_v20, %v543_v22  ;;  %v520_v27 = vsel %vm3944_vm12, %v508_v21, %v515_v23 }
 0x123   : > { %558 = vst.msk [vmem:[#allocation2 + $0x68] sm:$0xff] %vm3315_vm7, %v548_v26  ;;  %v630_v28 = vsel %vm3942_vm15, %v620_v24, %v625_v25  ;;  %v2599_v23 = vld [vmem:[#allocation2 + $0xe0] sm:$0xf]  ;;  %v3025_v26 = vld [vmem:[#allocation2 + $0xe4] sm:$0xf0] }
 0x124   : > { %530 = vst.msk [vmem:[#allocation2 + $0x40] sm:$0xff] %vm3331_vm13, %v520_v27  ;;  %v2543_v50 = vld [vmem:[#allocation2 + $0x70] sm:$0xf]  ;;  %v3010_v51 = vld [vmem:[#allocation2 + $0x74] sm:$0xf] }
 0x125   : > { %640 = vst.msk [vmem:[#allocation2 + $0xd0] sm:$0xff] %vm3339_vm0, %v630_v28 }
 0x127   : > { %v647_v29 = vpop.permute.xlu0 %646  ;;  %v618_v30 = vpop.permute.xlu1 %617 }
 0x128   : > { %v652_v31 = vrot.slane %v647_v29, 4  ;;  %v624_v32 = vrot.slane %v618_v30, 4  ;;  %v541_v34 = vpop.permute.xlu2 %540 }
 0x129   : > { %v545_v35 = vrot.slane %v541_v34, 4 }
 0x12a   : > { %v657_v36 = vsel %vm654_vm9, %v647_v29, %v652_v31  ;;  %v629_v37 = vsel %vm3942_vm15, %v618_v30, %v624_v32  ;;  %v3009_v56 = vld [vmem:[#allocation2 + $0x64] sm:$0xf0]  ;;  %v2537_v57 = vld [vmem:[#allocation2 + $0x68] sm:$0xf0]  ;;  %v2600_v30 = vor.u32 %v3025_v26, %v2599_v23 }
 0x12b   : > { %667 = vst.msk [vmem:[#allocation2 + $0xf0] sm:$0xff] %vm3323_vm10, %v657_v36  ;;  %v550_v38 = vsel %vm546_vm6, %v541_v34, %v545_v35  ;;  %v2536_v4 = vor.u32 %v3009_v56, %v2535_v0  ;;  %v2540_v5 = vor.u32 %v3008_v1, %v2537_v57 }
 0x12c   : > { %639 = vst.msk [vmem:[#allocation2 + $0xc8] sm:$0xff] %vm3339_vm0, %v629_v37  ;;  %v2591_v34 = vld [vmem:[#allocation2 + $0xd0] sm:$0xf] }
 0x12d   : > { %560 = vst.msk [vmem:[#allocation2 + $0x78] sm:$0xff] %vm3315_vm7, %v550_v38 }
 0x12f   : > { %v512_v39 = vpop.permute.xlu0 %511  ;;  %v593_v40 = vpop.permute.xlu1 %592 }
 0x130   : > { %v517_v41 = vrot.slane %v512_v39, 4  ;;  %v598_v42 = vrot.slane %v593_v40, 4  ;;  %v485_v43 = vpop.permute.xlu2 %484 }
 0x131   : > { %v490_v45 = vrot.slane %v485_v43, 4 }
 0x132   : > { %v522_v46 = vsel %vm3944_vm12, %v512_v39, %v517_v41  ;;  %v603_v47 = vsel %vm600_vm3, %v593_v40, %v598_v42  ;;  %v2607_v20 = vld [vmem:[#allocation2 + $0xf0] sm:$0xf] }
 0x133   : > { %532 = vst.msk [vmem:[#allocation2 + $0x50] sm:$0xff] %vm3331_vm13, %v522_v46  ;;  %v495_v49 = vsel %vm3943_vm8, %v485_v43, %v490_v45 }
 0x134   : > { %613 = vst.msk [vmem:[#allocation2 + $0xb0] sm:$0xff] %vm3371_vm11, %v603_v47  ;;  %v3011_v52 = vld [vmem:[#allocation2 + $0x74] sm:$0xf0]  ;;  %v2545_v53 = vld [vmem:[#allocation2 + $0x78] sm:$0xf0] }
 0x135   : > { %505 = vst.msk [vmem:[#allocation2 + $0x30] sm:$0xff] %vm3378_vm14, %v495_v49  ;;  %v2544_v54 = vor.u32 %v3011_v52, %v2543_v50  ;;  %v2548_v55 = vor.u32 %v3010_v51, %v2545_v53  ;;  %v2519_v47 = vld [vmem:[#allocation2 + $0x40] sm:$0xf]  ;;  %v3021_v49 = vld [vmem:[#allocation2 + $0xc4] sm:$0xf0] }
 0x136   : > { %v3005_v50 = vld [vmem:[#allocation2 + $0x44] sm:$0xf0]  ;;  %v3004_v51 = vld [vmem:[#allocation2 + $0x44] sm:$0xf] }
 0x137   : > { %981 = vmatpush.bf16.msra.mxu2 %v2544_v54  ;;  %1038 = vmatpush.bf16.msrb.mxu1 %v2548_v55  ;;  %v481_v58 = vpop.permute.xlu0 %480  ;;  %v649_v59 = vpop.permute.xlu1 %648  ;;  %v2520_v54 = vor.u32 %v3005_v50, %v2519_v47  ;;  %v2583_v55 = vld [vmem:[#allocation2 + $0xc0] sm:$0xf]  ;;  %v2991_v50 = vld [vmem:[%s3935_s3 + $0x8] sm:$0xf0] }
 0x138   : > { %v488_v60 = vrot.slane %v481_v58, 4  ;;  %v653_v61 = vrot.slane %v649_v59, 4  ;;  %v589_v62 = vpop.permute.xlu2 %588 }
 0x139   : > { %v596_v2 = vrot.slane %v589_v62, 4 }
 0x13a   : > { %v493_v6 = vsel %vm3943_vm8, %v481_v58, %v488_v60  ;;  %v658_v8 = vsel %vm654_vm9, %v649_v59, %v653_v61  ;;  %v2527_v37 = vld [vmem:[#allocation2 + $0x50] sm:$0xf]  ;;  %v3006_v39 = vld [vmem:[#allocation2 + $0x54] sm:$0xf]  ;;  %v2584_v59 = vor.u32 %v3021_v49, %v2583_v55  ;;  %v2521_v60 = vld [vmem:[#allocation2 + $0x48] sm:$0xf0] }
 0x13b   : > { %503 = vst.msk [vmem:[#allocation2 + $0x20] sm:$0xff] %vm3378_vm14, %v493_v6  ;;  %v601_v9 = vsel %vm600_vm3, %v589_v62, %v596_v2  ;;  %982 = vmatpush.bf16.msra.mxu2 %v2536_v4  ;;  %1039 = vmatpush.bf16.msrb.mxu1 %v2540_v5  ;;  %v2524_v0 = vor.u32 %v3004_v51, %v2521_v60  ;;  %v2463_v49 = vld [vmem:[%s3935_s3] sm:$0xf] }
 0x13c   : > { %668 = vst.msk [vmem:[#allocation2 + $0xf8] sm:$0xff] %vm3323_vm10, %v658_v8  ;;  %v2511_v1 = vld [vmem:[#allocation2 + $0x30] sm:$0xf]  ;;  %v3002_v8 = vld [vmem:[#allocation2 + $0x34] sm:$0xf] }
 0x13d   : > { %611 = vst.msk [vmem:[#allocation2 + $0xa0] sm:$0xff] %vm3371_vm11, %v601_v9 }
 0x13f   : > { %v622_v10 = vpop.permute.xlu0 %621  ;;  %v514_v11 = vpop.permute.xlu1 %513 }
 0x140   : > { %v626_v13 = vrot.slane %v622_v10, 4  ;;  %v518_v14 = vrot.slane %v514_v11, 4  ;;  %v595_v15 = vpop.permute.xlu2 %594 }
 0x141   : > { %v599_v16 = vrot.slane %v595_v15, 4 }
 0x142   : > { %v631_v17 = vsel %vm3942_vm15, %v622_v10, %v626_v13  ;;  %v523_v18 = vsel %vm3944_vm12, %v514_v11, %v518_v14  ;;  %vm3408_vm15 = vmor %vm582_vm1, %vm469_vm2  ;;  %vm690_vm1 = vcmask 113668   ;;  %v2575_v13 = vld [vmem:[#allocation2 + $0xb0] sm:$0xf] }
 0x143   : > { %641 = vst.msk [vmem:[#allocation2 + $0xd8] sm:$0xff] %vm3339_vm0, %v631_v17  ;;  %v604_v19 = vsel %vm600_vm3, %v595_v15, %v599_v16  ;;  %v3027_v21 = vld [vmem:[#allocation2 + $0xf4] sm:$0xf0]  ;;  %vm3422_vm12 = vmor %vm690_vm1, %vm469_vm2  ;;  %vm3945_vm2 = vcmask 261120   ;;  %vm3965_vm1 = vcmask 1031168  }
 0x144   : > { %533 = vst.msk [vmem:[#allocation2 + $0x58] sm:$0xff] %vm3331_vm13, %v523_v18  ;;  %v2608_v22 = vor.u32 %v3027_v21, %v2607_v20  ;;  %v2503_v20 = vld [vmem:[#allocation2 + $0x20] sm:$0xf] }
 0x145   : > { %614 = vst.msk [vmem:[#allocation2 + $0xb8] sm:$0xff] %vm3371_vm11, %v604_v19 }
 0x146   : > { %1000 = vmatpush.bf16.msra.mxu3 %v2608_v22 }
 0x147   : > { %v487_v24 = vpop.permute.xlu0 %486  ;;  %v483_v25 = vpop.permute.xlu1 %482 }
 0x148   : > { %v491_v27 = vrot.slane %v487_v24, 4  ;;  %v489_v28 = vrot.slane %v483_v25, 4  ;;  %v568_v29 = vpop.permute.xlu2 %567 }
 0x149   : > { %v572_v32 = vrot.slane %v568_v29, 4 }
 0x14a   : > { %v496_v35 = vsel %vm3943_vm8, %v487_v24, %v491_v27  ;;  %v494_v36 = vsel %vm3943_vm8, %v483_v25, %v489_v28  ;;  %1001 = vmatpush.bf16.msra.mxu3 %v2600_v30  ;;  %v3023_v38 = vld [vmem:[#allocation2 + $0xd4] sm:$0xf0]  ;;  %vm3946_vm8 = vcmask 883712   ;;  %v3000_v25 = vld [vmem:[#allocation2 + $0x24] sm:$0xf] }
 0x14b   : > { %506 = vst.msk [vmem:[#allocation2 + $0x38] sm:$0xff] %vm3378_vm14, %v496_v35  ;;  %v577_v40 = vsel %vm573_vm5, %v568_v29, %v572_v32  ;;  %v3007_v41 = vld [vmem:[#allocation2 + $0x54] sm:$0xf0]  ;;  %v2592_v42 = vor.u32 %v3023_v38, %v2591_v34  ;;  %v2529_v43 = vld [vmem:[#allocation2 + $0x58] sm:$0xf0] }
 0x14c   : > { %504 = vst.msk [vmem:[#allocation2 + $0x28] sm:$0xff] %vm3378_vm14, %v494_v36  ;;  %v2528_v45 = vor.u32 %v3007_v41, %v2527_v37  ;;  %v2532_v46 = vor.u32 %v3006_v39, %v2529_v43  ;;  %v3019_v2 = vld [vmem:[#allocation2 + $0xb4] sm:$0xf0]  ;;  %v2567_v32 = vld [vmem:[#allocation2 + $0xa0] sm:$0xf] }
 0x14d   : > { %587 = vst.msk [vmem:[#allocation2 + $0x98] sm:$0xff] %vm3408_vm15, %v577_v40  ;;  %v2576_v15 = vor.u32 %v3019_v2, %v2575_v13  ;;  %v2999_v28 = vld [vmem:[#allocation2 + $0x14] sm:$0xf0]  ;;  %v2497_v35 = vld [vmem:[#allocation2 + $0x18] sm:$0xf0] }
 0x14e   : > { %983 = vmatpush.bf16.msra.mxu2 %v2528_v45  ;;  %1002 = vmatpush.bf16.msra.mxu3 %v2592_v42  ;;  %v2495_v37 = vld [vmem:[#allocation2 + $0x10] sm:$0xf]  ;;  %v2997_v39 = vld [vmem:[#allocation2 + $0x4] sm:$0xf0]  ;;  %v2998_v41 = vld [vmem:[#allocation2 + $0x14] sm:$0xf] }
 0x14f   : > { %1040 = vmatpush.bf16.msrb.mxu1 %v2532_v46  ;;  %v591_v52 = vpop.permute.xlu0 %590  ;;  %v566_v53 = vpop.permute.xlu1 %565  ;;  %v2496_v40 = vor.u32 %v2999_v28, %v2495_v37  ;;  %v2500_v43 = vor.u32 %v2998_v41, %v2497_v35  ;;  %v2489_v45 = vld [vmem:[#allocation2 + $0x8] sm:$0xf0]  ;;  %v2609_v46 = vld [vmem:[#allocation2 + $0xf8] sm:$0xf0]  ;;  %v2992_v35 = vld [vmem:[%s3935_s3 + $0x10] sm:$0xf0] }
 0x150   : > { %v597_v56 = vrot.slane %v591_v52, 4  ;;  %v571_v57 = vrot.slane %v566_v53, 4  ;;  %v674_v58 = vpop.permute.xlu2 %673  ;;  %v3018_v41 = vld [vmem:[#allocation2 + $0xb4] sm:$0xf] }
 0x151   : > { %v679_v62 = vrot.slane %v674_v58, 4 }
 0x152   : > { %v602_v4 = vsel %vm600_vm3, %v591_v52, %v597_v56  ;;  %v576_v5 = vsel %vm573_vm5, %v566_v53, %v571_v57  ;;  %984 = vmatpush.bf16.msra.mxu2 %v2520_v54  ;;  %1003 = vmatpush.bf16.msra.mxu3 %v2584_v59  ;;  %v3003_v6 = vld [vmem:[#allocation2 + $0x34] sm:$0xf0]  ;;  %v2513_v9 = vld [vmem:[#allocation2 + $0x38] sm:$0xf0]  ;;  %v2487_v53 = vld [vmem:[#allocation2] sm:$0xf] }
 0x153   : > { %612 = vst.msk [vmem:[#allocation2 + $0xa8] sm:$0xff] %vm3371_vm11, %v602_v4  ;;  %v684_v10 = vsel %vm3946_vm8, %v674_v58, %v679_v62  ;;  %1041 = vmatpush.bf16.msrb.mxu1 %v2524_v0  ;;  %v2512_v11 = vor.u32 %v3003_v6, %v2511_v1  ;;  %v2516_v14 = vor.u32 %v3002_v8, %v2513_v9  ;;  %v3001_v16 = vld [vmem:[#allocation2 + $0x24] sm:$0xf0]  ;;  %v2505_v17 = vld [vmem:[#allocation2 + $0x28] sm:$0xf0] }
 0x154   : > { %586 = vst.msk [vmem:[#allocation2 + $0x90] sm:$0xff] %vm3408_vm15, %v576_v5  ;;  %v2504_v24 = vor.u32 %v3001_v16, %v2503_v20  ;;  %v2508_v27 = vor.u32 %v3000_v25, %v2505_v17  ;;  %v3015_v47 = vld [vmem:[#allocation2 + $0x94] sm:$0xf0]  ;;  %v2488_v57 = vor.u32 %v2997_v39, %v2487_v53  ;;  %v2996_v58 = vld [vmem:[#allocation2 + $0x4] sm:$0xf]  ;;  %v2464_v0 = vor.u32 %v2991_v50, %v2463_v49 }
 0x155   : > { %694 = vst.msk [vmem:[#allocation2 + $0x110] sm:$0xff] %vm3422_vm12, %v684_v10  ;;  %v3026_v59 = vld [vmem:[#allocation2 + $0xf4] sm:$0xf]  ;;  %v2492_v60 = vor.u32 %v2996_v58, %v2489_v45  ;;  %v3024_v1 = vld [vmem:[#allocation2 + $0xe4] sm:$0xf] }
 0x156   : > { %985 = vmatpush.bf16.msra.mxu2 %v2512_v11  ;;  %1004 = vmatpush.bf16.msra.mxu3 %v2576_v15  ;;  %v2612_v62 = vor.u32 %v3026_v59, %v2609_v46  ;;  %v2990_v6 = vld [vmem:[%s3935_s3 + $0x4] sm:$0xf]  ;;  %v2465_v8 = vld [vmem:[%s3935_s3 + $0xc] sm:$0xf0]  ;;  %v2601_v11 = vld [vmem:[#allocation2 + $0xe8] sm:$0xf0] }
 0x157   : > { %1042 = vmatpush.bf16.msrb.mxu1 %v2516_v14  ;;  %v562_v18 = vpop.permute.xlu0 %561  ;;  %v564_v19 = vpop.permute.xlu1 %563  ;;  %v2604_v13 = vor.u32 %v3024_v1, %v2601_v11  ;;  %v3462_v14 = vor.u32 %v2990_v6, %v2465_v8  ;;  %v2593_v15 = vld [vmem:[#allocation2 + $0xd8] sm:$0xf0]  ;;  %v3022_v16 = vld [vmem:[#allocation2 + $0xd4] sm:$0xf]  ;;  %v740_v20 = vld [vmem:[%s3936_s4] sm:$0xff] }
 0x158   : > { %v569_v21 = vrot.slane %v562_v18, 4  ;;  %v570_v22 = vrot.slane %v564_v19, 4  ;;  %v672_v23 = vpop.permute.xlu2 %671  ;;  %v2596_v17 = vor.u32 %v3022_v16, %v2593_v15  ;;  %746 = vperm.xlu2 %3147, %v740_v20   ;;  %v2477_v49 = vld [vmem:[%s3935_s3 + $0x24] sm:$0xf0]  ;;  %v3016_v50 = vld [vmem:[#allocation2 + $0xa4] sm:$0xf] }
 0x159   : > { %v678_v26 = vrot.slane %v672_v23, 4  ;;  %v2483_v59 = vld [vmem:[%s3935_s3 + $0x20] sm:$0xf] }
 0x15a   : > { %v574_v29 = vsel %vm573_vm5, %v562_v18, %v569_v21  ;;  %v575_v30 = vsel %vm573_vm5, %v564_v19, %v570_v22  ;;  %986 = vmatpush.bf16.msra.mxu2 %v2504_v24  ;;  %v3017_v34 = vld [vmem:[#allocation2 + $0xa4] sm:$0xf0]  ;;  %v2585_v19 = vld [vmem:[#allocation2 + $0xc8] sm:$0xf0] }
 0x15b   : > { %584 = vst.msk [vmem:[#allocation2 + $0x80] sm:$0xff] %vm3408_vm15, %v574_v29  ;;  %v683_v36 = vsel %vm3946_vm8, %v672_v23, %v678_v26  ;;  %1043 = vmatpush.bf16.msrb.mxu1 %v2508_v27  ;;  %v2568_v38 = vor.u32 %v3017_v34, %v2567_v32  ;;  %v2559_v42 = vld [vmem:[#allocation2 + $0x90] sm:$0xf]  ;;  %v3020_v26 = vld [vmem:[#allocation2 + $0xc4] sm:$0xf] }
 0x15c   : > { %585 = vst.msk [vmem:[#allocation2 + $0x88] sm:$0xff] %vm3408_vm15, %v575_v30  ;;  %v2560_v54 = vor.u32 %v3015_v47, %v2559_v42  ;;  %v2623_v18 = vld [vmem:[#allocation2 + $0x110] sm:$0xf]  ;;  %v3030_v22 = vld [vmem:[#allocation2 + $0x114] sm:$0xf]  ;;  %v2588_v30 = vor.u32 %v3020_v26, %v2585_v19 }
 0x15d   : > { %693 = vst.msk [vmem:[#allocation2 + $0x108] sm:$0xff] %vm3422_vm12, %v683_v36  ;;  %1005 = vmatpush.bf16.msra.mxu3 %v2568_v38  ;;  %v2577_v29 = vld [vmem:[#allocation2 + $0xb8] sm:$0xf0]  ;;  %v2475_v32 = vld [vmem:[%s3935_s3 + $0x18] sm:$0xf] }
 0x15e   : > { %987 = vmatpush.bf16.msra.mxu2 %v2496_v40  ;;  %v2471_v34 = vld [vmem:[%s3935_s3 + $0x8] sm:$0xf]  ;;  %v2994_v38 = vld [vmem:[%s3935_s3 + $0x20] sm:$0xf0]  ;;  %v2569_v46 = vld [vmem:[#allocation2 + $0xa8] sm:$0xf0] }
 0x15f   : > { %1044 = vmatpush.bf16.msrb.mxu1 %v2500_v43  ;;  %v676_v51 = vpop.permute.xlu0 %675  ;;  %v670_v52 = vpop.permute.xlu1 %669  ;;  %v2472_v42 = vor.u32 %v2992_v35, %v2471_v34  ;;  %v2580_v43 = vor.u32 %v3018_v41, %v2577_v29  ;;  %v2476_v45 = vor.u32 %v2994_v38, %v2475_v32  ;;  %v2993_v47 = vld [vmem:[%s3935_s3 + $0x1c] sm:$0xf]  ;;  %v3014_v53 = vld [vmem:[#allocation2 + $0x94] sm:$0xf] }
 0x160   : > { %v680_v55 = vrot.slane %v676_v51, 4  ;;  %v677_v56 = vrot.slane %v670_v52, 4 }
 0x161   : > { %1006 = vmatpush.bf16.msra.mxu3 %v2560_v54  ;;  %v2561_v54 = vld [vmem:[#allocation2 + $0x98] sm:$0xf0] }
 0x162   : > { %v685_v2 = vsel %vm3946_vm8, %v676_v51, %v680_v55  ;;  %v682_v4 = vsel %vm3946_vm8, %v670_v52, %v677_v56  ;;  %988 = vmatpush.bf16.msra.mxu2 %v2488_v57  ;;  %v2551_v5 = vld [vmem:[#allocation2 + $0x80] sm:$0xf]  ;;  %v2572_v51 = vor.u32 %v3016_v50, %v2569_v46  ;;  %v2480_v52 = vor.u32 %v2993_v47, %v2477_v49  ;;  %v3012_v56 = vld [vmem:[#allocation2 + $0x84] sm:$0xf] }
 0x163   : > { %695 = vst.msk [vmem:[#allocation2 + $0x118] sm:$0xff] %vm3422_vm12, %v685_v2  ;;  %1045 = vmatpush.bf16.msrb.mxu1 %v2492_v60  ;;  %v3013_v9 = vld [vmem:[#allocation2 + $0x84] sm:$0xf0]  ;;  %v2564_v55 = vor.u32 %v3014_v53, %v2561_v54  ;;  %v2553_v57 = vld [vmem:[#allocation2 + $0x88] sm:$0xf0] }
 0x164   : > { %692 = vst.msk [vmem:[#allocation2 + $0x100] sm:$0xff] %vm3422_vm12, %v682_v4  ;;  %v2552_v10 = vor.u32 %v3013_v9, %v2551_v5  ;;  %v3029_v36 = vld [vmem:[#allocation2 + $0x104] sm:$0xf0]  ;;  %v2617_v37 = vld [vmem:[#allocation2 + $0x108] sm:$0xf0]  ;;  %v2556_v58 = vor.u32 %v3012_v56, %v2553_v57 }
 0x165   : > { %989 = vmatmul.bf16.vlgmr.msra.gmra.mxu2 %v2464_v0  ;;  %v2995_v60 = vld [vmem:[%s3935_s3 + $0x28] sm:$0xf0] }
 0x166   : > { %1057 = vmatpush.bf16.msrb.mxu2 %v2612_v62  ;;  %1046 = vmatmul.bf16.vlgmr.msrb.gmra.mxu1 %v2464_v0  ;;  %v2484_v62 = vor.u32 %v2995_v60, %v2483_v59 }
 0x167   : > { %1007 = vmatpush.bf16.msra.mxu3 %v2552_v10  ;;  %v762_v54 = vpop.permute.xlu1 %761 }
 0x16a   : > { %1058 = vmatpush.bf16.msrb.mxu2 %v2604_v13  ;;  %1008 = vmatmul.bf16.vlgmr.msra.gmra.mxu3 %v3462_v14  ;;  %v3031_v21 = vld [vmem:[#allocation2 + $0x114] sm:$0xf0]  ;;  %v2625_v23 = vld [vmem:[#allocation2 + $0x118] sm:$0xf0]  ;;  %v757_v13 = vpop.permute.xlu0 %756 }
 0x16b   : > { %v2624_v24 = vor.u32 %v3031_v21, %v2623_v18  ;;  %v2628_v25 = vor.u32 %v3030_v22, %v2625_v23  ;;  %v2615_v27 = vld [vmem:[#allocation2 + $0x100] sm:$0xf]  ;;  %v3028_v28 = vld [vmem:[#allocation2 + $0x104] sm:$0xf] }
 0x16c   : > { %v2616_v39 = vor.u32 %v3029_v36, %v2615_v27  ;;  %v2620_v40 = vor.u32 %v3028_v28, %v2617_v37 }
 0x16d   : > { %1025 = vmatpush.bf16.msrb.mxu0 %v2624_v24  ;;  %1082 = vmatpush.bf16.msrb.mxu3 %v2628_v25 }
 0x16e   : > { %1059 = vmatpush.bf16.msrb.mxu2 %v2596_v17 }
 0x171   : > { %1026 = vmatpush.bf16.msrb.mxu0 %v2616_v39  ;;  %1083 = vmatpush.bf16.msrb.mxu3 %v2620_v40 }
 0x172   : > { %1060 = vmatpush.bf16.msrb.mxu2 %v2588_v30  ;;  %v752_v25 = vpop.permute.xlu0 %751 }
 0x174   : > { %2629 = vmatmul.msk.bf16.vlgmr.msrb.gmra.mxu0 %vm3945_vm2, %v2472_v42 }
 0x175   : > { %994 = vmatmul.bf16.gmra.mxu2 %v2476_v45 }
 0x176   : > { %1061 = vmatpush.bf16.msrb.mxu2 %v2580_v43  ;;  %1051 = vmatmul.bf16.gmra.mxu1 %v2476_v45 }
 0x17a   : > { %1062 = vmatpush.bf16.msrb.mxu2 %v2572_v51  ;;  %1013 = vmatmul.bf16.gmra.mxu3 %v2480_v52 }
 0x17e   : > { %1063 = vmatpush.bf16.msrb.mxu2 %v2564_v55 }
 0x182   : > { %1064 = vmatpush.bf16.msrb.mxu2 %v2556_v58 }
 0x184   : > { %2630 = vmatmul.msk.bf16.gmra.mxu0 %vm3945_vm2, %v2484_v62 }
 0x185   : > { %1065 = vmatmul.bf16.vlgmr.msrb.gmra.mxu2 %v3462_v14 }
 0x18a   : > { %2631 = vmatmul.msk.bf16.vlgmr.msrb.gmra.mxu3 %vm3945_vm2, %v2472_v42 }
 0x195   : > { %1070 = vmatmul.bf16.gmra.mxu2 %v2480_v52 }
 0x19a   : > { %2632 = vmatmul.msk.bf16.gmra.mxu3 %vm3945_vm2, %v2484_v62  ;;  %vm3966_vm2 = vcmask 900096  }
 0x19b   : > { %vm3967_vm8 = vmmov %vm3966_vm2 }
 0x1b2   : > { %v747_v10 = vpop.permute.xlu2 %746 }
 0x1e3   : > { %v1047_v8 = vpop.f32.mrf.mxu1 }
 0x1e4   : > { %v1048_v17 = vadd.f32 %v1047_v8, %v747_v10 }
 0x1e8   : > { %v990_v0 = vpop.f32.mrf.mxu2 }
 0x1e9   : > { %v991_v16 = vadd.f32 %v990_v0, %v747_v10 }
 0x1eb   : > { %v1049_v20 = vpop.f32.mrf.mxu1 }
 0x1ec   : > { %v1050_v30 = vadd.f32 %v1049_v20, %v752_v25 }
 0x1ed   : > { %v1009_v1 = vpop.f32.mrf.mxu3 }
 0x1ee   : > { %v1010_v18 = vadd.f32 %v1009_v1, %v991_v16  ;;  %v1351_v16 = vld [vmem:[%s3938_s6] sm:$0xff] }
 0x1f0   : > { %v992_v2 = vpop.f32.mrf.mxu2 }
 0x1f1   : > { %v1028_v11 = vpop.f32.mrf.mxu0  ;;  %v993_v26 = vadd.f32 %v992_v2, %v752_v25 }
 0x1f2   : > { %v1029_v21 = vadd.f32 %v1028_v11, %v1010_v18  ;;  %v1353_v11 = vld [vmem:[%s3938_s6 + $0x10] sm:$0xff] }
 0x1f3   : > { %v1052_v37 = vpop.f32.mrf.mxu1 }
 0x1f4   : > { %v1095_v27 = vmax.f32 %v1029_v21, 0.0  ;;  %v1053_v46 = vadd.f32 %v1052_v37, %v757_v13 }
 0x1f5   : > { %v1011_v4 = vpop.f32.mrf.mxu3 }
 0x1f6   : > { %v1012_v32 = vadd.f32 %v1011_v4, %v993_v26 }
 0x1f8   : > { %v995_v5 = vpop.f32.mrf.mxu2 }
 0x1f9   : > { %v1030_v22 = vpop.f32.mrf.mxu0  ;;  %v996_v41 = vadd.f32 %v995_v5, %v757_v13  ;;  %v1352_v13 = vld [vmem:[%s3938_s6 + $0x8] sm:$0xff] }
 0x1fa   : > { %v1031_v35 = vadd.f32 %v1030_v22, %v1012_v32 }
 0x1fb   : > { %v1054_v55 = vpop.f32.mrf.mxu1 }
 0x1fc   : > { %v1097_v42 = vmax.f32 %v1031_v35, 0.0  ;;  %v1055_v62 = vadd.f32 %v1054_v55, %v762_v54 }
 0x1fd   : > { %v1014_v6 = vpop.f32.mrf.mxu3 }
 0x1fe   : > { %v1015_v47 = vadd.f32 %v1014_v6, %v996_v41 }
 0x200   : > { %v997_v9 = vpop.f32.mrf.mxu2 }
 0x201   : > { %v1033_v40 = vpop.f32.mrf.mxu0  ;;  %v998_v56 = vadd.f32 %v997_v9, %v762_v54 }
 0x202   : > { %v1034_v50 = vadd.f32 %v1033_v40, %v1015_v47 }
 0x204   : > { %v1099_v57 = vmax.f32 %v1034_v50, 0.0 }
 0x205   : > { %v1016_v15 = vpop.f32.mrf.mxu3 }
 0x206   : > { %v1017_v0 = vadd.f32 %v1016_v15, %v998_v56  ;;  %v1354_v15 = vld [vmem:[%s3938_s6 + $0x18] sm:$0xff] }
 0x208   : > { %v1066_v14 = vpop.f32.mrf.mxu2 }
 0x209   : > { %v1067_v19 = vadd.f32 %v1066_v14, %v1048_v17  ;;  %v1035_v59 = vpop.f32.mrf.mxu0 }
 0x20a   : > { %v1036_v2 = vadd.f32 %v1035_v59, %v1017_v0 }
 0x20c   : > { %v1101_v8 = vmax.f32 %v1036_v2, 0.0 }
 0x20d   : > { %v1085_v23 = vpop.f32.mrf.mxu3 }
 0x20e   : > { %v1086_v24 = vadd.f32 %v1085_v23, %v1067_v19 }
 0x210   : > { %v1096_v28 = vmax.f32 %v1086_v24, 0.0  ;;  %v1068_v29 = vpop.f32.mrf.mxu2 }
 0x211   : > { %v1069_v36 = vadd.f32 %v1068_v29, %v1050_v30 }
 0x212   : > { %v3497_v34 = vpack.c.bf16 %v1096_v28, %v1095_v27 }
 0x214   : > { %1107 = vst.msk [vmem:[#allocation2] sm:$0xff] %vm3250_vm4, %v3497_v34  ;;  %1235 = vrot.lane.b32.xlu0 %v3497_v34, %s3157_s28  ;;  %1259 = vrot.lane.b32.xlu1 %v3497_v34, %s3158_s29 }
 0x215   : > { %1163 = vrot.lane.b32.xlu2 %v3497_v34, %s3159_s11  ;;  %v1087_v38 = vpop.f32.mrf.mxu3 }
 0x216   : > { %v1088_v39 = vadd.f32 %v1087_v38, %v1069_v36 }
 0x218   : > { %v1098_v43 = vmax.f32 %v1088_v39, 0.0  ;;  %v1071_v45 = vpop.f32.mrf.mxu2 }
 0x219   : > { %v1072_v51 = vadd.f32 %v1071_v45, %v1053_v46 }
 0x21a   : > { %v1104_v49 = vpack.c.bf16 %v1098_v43, %v1097_v42 }
 0x21c   : > { %1108 = vst.msk [vmem:[#allocation2 + $0x8] sm:$0xff] %vm3250_vm4, %v1104_v49  ;;  %1165 = vrot.lane.b32.xlu0 %v1104_v49, %s3159_s11  ;;  %1139 = vrot.lane.b32.xlu1 %v3497_v34, %s3160_s12 }
 0x21d   : > { %1261 = vrot.lane.b32.xlu2 %v1104_v49, %s3158_s29  ;;  %v1090_v52 = vpop.f32.mrf.mxu3 }
 0x21e   : > { %v1091_v53 = vadd.f32 %v1090_v52, %v1072_v51 }
 0x220   : > { %v1100_v58 = vmax.f32 %v1091_v53, 0.0  ;;  %v1073_v60 = vpop.f32.mrf.mxu2 }
 0x221   : > { %v1074_v4 = vadd.f32 %v1073_v60, %v1055_v62 }
 0x222   : > { %v1105_v1 = vpack.c.bf16 %v1100_v58, %v1099_v57 }
 0x224   : > { %1109 = vst.msk [vmem:[#allocation2 + $0x10] sm:$0xff] %vm3250_vm4, %v1105_v1  ;;  %1263 = vrot.lane.b32.xlu0 %v1105_v1, %s3158_s29  ;;  %1237 = vrot.lane.b32.xlu1 %v1104_v49, %s3157_s28 }
 0x225   : > { %1141 = vrot.lane.b32.xlu2 %v1104_v49, %s3160_s12  ;;  %v1092_v5 = vpop.f32.mrf.mxu3 }
 0x226   : > { %v1093_v6 = vadd.f32 %v1092_v5, %v1074_v4 }
 0x228   : > { %v1102_v9 = vmax.f32 %v1093_v6, 0.0 }
 0x22a   : > { %v1106_v10 = vpack.c.bf16 %v1102_v9, %v1101_v8 }
 0x22c   : > { %1110 = vst.msk [vmem:[#allocation2 + $0x18] sm:$0xff] %vm3250_vm4, %v1106_v10  ;;  %1143 = vrot.lane.b32.xlu0 %v1105_v1, %s3160_s12  ;;  %1167 = vrot.lane.b32.xlu1 %v1105_v1, %s3159_s11 }
 0x22d   : > { %1239 = vrot.lane.b32.xlu2 %v1105_v1, %s3157_s28 }
 0x234   : > { %1115 = vrot.lane.b32.xlu0 %v3497_v34, %s3162_s14  ;;  %1215 = vrot.lane.b32.xlu1 %v1105_v1, %s3161_s13 }
 0x235   : > { %1169 = vrot.lane.b32.xlu2 %v1106_v10, %s3159_s11 }
 0x23c   : > { %1241 = vrot.lane.b32.xlu0 %v1106_v10, %s3157_s28  ;;  %1265 = vrot.lane.b32.xlu1 %v1106_v10, %s3158_s29 }
 0x23d   : > { %1119 = vrot.lane.b32.xlu2 %v1105_v1, %s3162_s14 }
 0x244   : > { %1121 = vrot.lane.b32.xlu0 %v1106_v10, %s3162_s14  ;;  %1145 = vrot.lane.b32.xlu1 %v1106_v10, %s3160_s12 }
 0x245   : > { %1211 = vrot.lane.b32.xlu2 %v3497_v34, %s3161_s13 }
 0x24c   : > { %1213 = vrot.lane.b32.xlu0 %v1104_v49, %s3161_s13  ;;  %1117 = vrot.lane.b32.xlu1 %v1104_v49, %s3162_s14 }
 0x24d   : > { %1217 = vrot.lane.b32.xlu2 %v1106_v10, %s3161_s13 }
 0x254   : > { %1187 = vrot.lane.b32.xlu0 %v3497_v34, %s3163_s15  ;;  %1191 = vrot.lane.b32.xlu1 %v1105_v1, %s3163_s15 }
 0x255   : > { %1193 = vrot.lane.b32.xlu2 %v1106_v10, %s3163_s15 }
 0x25c   : > { %1289 = vrot.lane.b32.xlu0 %v1106_v10, %s3164_s16  ;;  %1189 = vrot.lane.b32.xlu1 %v1104_v49, %s3163_s15 }
 0x25d   : > { %1287 = vrot.lane.b32.xlu2 %v1105_v1, %s3164_s16 }
 0x264   : > { %1367 = vperm.xlu0 %3145, %v1353_v11   ;;  %1283 = vrot.lane.b32.xlu1 %v3497_v34, %s3164_s16 }
 0x265   : > { %1285 = vrot.lane.b32.xlu2 %v1104_v49, %s3164_s16 }
 0x26c   : > { %1362 = vperm.xlu0 %3145, %v1352_v13   ;;  %1372 = vperm.xlu1 %3146, %v1354_v15  }
 0x26d   : > { %1357 = vperm.xlu2 %3147, %v1351_v16  }
 0x26f   : > { %v1164_v17 = vpop.permute.xlu2 %1163 }
 0x270   : > { %v1171_v14 = vrot.slane %v1164_v17, 4 }
 0x272   : > { %v1175_v18 = vsel %vm546_vm6, %v1164_v17, %v1171_v14 }
 0x273   : > { %1183 = vst.msk [vmem:[#allocation2 + $0x60] sm:$0xff] %vm3315_vm7, %v1175_v18 }
 0x277   : > { %v1262_v19 = vpop.permute.xlu2 %1261 }
 0x278   : > { %v1268_v20 = vrot.slane %v1262_v19, 4 }
 0x27a   : > { %v1272_v21 = vsel %vm654_vm9, %v1262_v19, %v1268_v20 }
 0x27b   : > { %1280 = vst.msk [vmem:[#allocation2 + $0xe8] sm:$0xff] %vm3323_vm10, %v1272_v21 }
 0x27f   : > { %v1142_v22 = vpop.permute.xlu2 %1141 }
 0x280   : > { %v1148_v23 = vrot.slane %v1142_v22, 4 }
 0x282   : > { %v1152_v24 = vsel %vm3965_vm1, %v1142_v22, %v1148_v23 }
 0x283   : > { %1160 = vst.msk [vmem:[#allocation2 + $0x48] sm:$0xff] %vm3331_vm13, %v1152_v24 }
 0x286   : > { %v1236_v25 = vpop.permute.xlu0 %1235  ;;  %v1260_v26 = vpop.permute.xlu1 %1259 }
 0x287   : > { %v1243_v27 = vrot.slane %v1236_v25, 4  ;;  %v1267_v28 = vrot.slane %v1260_v26, 4  ;;  %v1240_v29 = vpop.permute.xlu2 %1239 }
 0x288   : > { %v1245_v30 = vrot.slane %v1240_v29, 4 }
 0x289   : > { %v1247_v32 = vsel %vm3966_vm2, %v1236_v25, %v1243_v27  ;;  %v1271_v34 = vsel %vm654_vm9, %v1260_v26, %v1267_v28  ;;  %vm3968_vm2 = vmmov %vm3965_vm1  ;;  %vm3969_vm1 = vcmask 1039360   ;;  %v2707_v25 = vld [vmem:[#allocation2 + $0x60] sm:$0xf]  ;;  %v3050_v26 = vld [vmem:[#allocation2 + $0x64] sm:$0xf] }
 0x28a   : > { %1255 = vst.msk [vmem:[#allocation2 + $0xc0] sm:$0xff] %vm3339_vm0, %v1247_v32  ;;  %v1249_v35 = vsel %vm3967_vm8, %v1240_v29, %v1245_v30 }
 0x28b   : > { %1279 = vst.msk [vmem:[#allocation2 + $0xe0] sm:$0xff] %vm3323_vm10, %v1271_v34 }
 0x28c   : > { %1257 = vst.msk [vmem:[#allocation2 + $0xd0] sm:$0xff] %vm3339_vm0, %v1249_v35 }
 0x28e   : > { %v1166_v36 = vpop.permute.xlu0 %1165  ;;  %v1140_v37 = vpop.permute.xlu1 %1139 }
 0x28f   : > { %v1172_v38 = vrot.slane %v1166_v36, 4  ;;  %v1147_v39 = vrot.slane %v1140_v37, 4  ;;  %v1170_v40 = vpop.permute.xlu2 %1169 }
 0x290   : > { %v1174_v41 = vrot.slane %v1170_v40, 4 }
 0x291   : > { %v1176_v42 = vsel %vm546_vm6, %v1166_v36, %v1172_v38  ;;  %v1151_v43 = vsel %vm3968_vm2, %v1140_v37, %v1147_v39 }
 0x292   : > { %1184 = vst.msk [vmem:[#allocation2 + $0x68] sm:$0xff] %vm3315_vm7, %v1176_v42  ;;  %v1178_v45 = vsel %vm546_vm6, %v1170_v40, %v1174_v41 }
 0x293   : > { %1159 = vst.msk [vmem:[#allocation2 + $0x40] sm:$0xff] %vm3331_vm13, %v1151_v43 }
 0x294   : > { %1186 = vst.msk [vmem:[#allocation2 + $0x78] sm:$0xff] %vm3315_vm7, %v1178_v45 }
 0x296   : > { %v1264_v46 = vpop.permute.xlu0 %1263  ;;  %v1238_v47 = vpop.permute.xlu1 %1237 }
 0x297   : > { %v1269_v49 = vrot.slane %v1264_v46, 4  ;;  %v1244_v50 = vrot.slane %v1238_v47, 4  ;;  %v1120_v51 = vpop.permute.xlu2 %1119 }
 0x298   : > { %v1125_v52 = vrot.slane %v1120_v51, 4 }
 0x299   : > { %v1273_v53 = vsel %vm654_vm9, %v1264_v46, %v1269_v49  ;;  %v1248_v54 = vsel %vm3967_vm8, %v1238_v47, %v1244_v50  ;;  %vm3970_vm8 = vmmov %vm3969_vm1  ;;  %v3051_v21 = vld [vmem:[#allocation2 + $0x64] sm:$0xf0]  ;;  %v2709_v22 = vld [vmem:[#allocation2 + $0x68] sm:$0xf0] }
 0x29a   : > { %1281 = vst.msk [vmem:[#allocation2 + $0xf0] sm:$0xff] %vm3323_vm10, %v1273_v53  ;;  %v1129_v55 = vsel %vm3969_vm1, %v1120_v51, %v1125_v52  ;;  %v2708_v30 = vor.u32 %v3051_v21, %v2707_v25  ;;  %v2712_v32 = vor.u32 %v3050_v26, %v2709_v22  ;;  %vm3971_vm1 = vcmask 900096   ;;  %v2771_v52 = vld [vmem:[#allocation2 + $0xe0] sm:$0xf]  ;;  %v2693_v25 = vld [vmem:[#allocation2 + $0x48] sm:$0xf0] }
 0x29b   : > { %1256 = vst.msk [vmem:[#allocation2 + $0xc8] sm:$0xff] %vm3339_vm0, %v1248_v54  ;;  %v3053_v15 = vld [vmem:[#allocation2 + $0x74] sm:$0xf0]  ;;  %v2717_v16 = vld [vmem:[#allocation2 + $0x78] sm:$0xf0] }
 0x29c   : > { %1137 = vst.msk [vmem:[#allocation2 + $0x30] sm:$0xff] %vm3378_vm14, %v1129_v55  ;;  %v3067_v55 = vld [vmem:[#allocation2 + $0xe4] sm:$0xf0] }
 0x29e   : > { %v1144_v56 = vpop.permute.xlu0 %1143  ;;  %v1168_v57 = vpop.permute.xlu1 %1167 }
 0x29f   : > { %v1149_v58 = vrot.slane %v1144_v56, 4  ;;  %v1173_v59 = vrot.slane %v1168_v57, 4  ;;  %v1212_v60 = vpop.permute.xlu2 %1211 }
 0x2a0   : > { %v1219_v62 = vrot.slane %v1212_v60, 4 }
 0x2a1   : > { %v1153_v0 = vsel %vm3968_vm2, %v1144_v56, %v1149_v58  ;;  %v1177_v1 = vsel %vm546_vm6, %v1168_v57, %v1173_v59  ;;  %vm3972_vm2 = vmmov %vm3970_vm8  ;;  %v2779_v49 = vld [vmem:[#allocation2 + $0xf0] sm:$0xf]  ;;  %v2772_v59 = vor.u32 %v3067_v55, %v2771_v52  ;;  %v3041_v55 = vld [vmem:[#allocation2 + $0x14] sm:$0xf0] }
 0x2a2   : > { %1161 = vst.msk [vmem:[#allocation2 + $0x50] sm:$0xff] %vm3331_vm13, %v1153_v0  ;;  %v1223_v2 = vsel %vm600_vm3, %v1212_v60, %v1219_v62 }
 0x2a3   : > { %1185 = vst.msk [vmem:[#allocation2 + $0x70] sm:$0xff] %vm3315_vm7, %v1177_v1 }
 0x2a4   : > { %1231 = vst.msk [vmem:[#allocation2 + $0xa0] sm:$0xff] %vm3371_vm11, %v1223_v2 }
 0x2a6   : > { %v1116_v4 = vpop.permute.xlu0 %1115  ;;  %v1216_v5 = vpop.permute.xlu1 %1215 }
 0x2a7   : > { %v1123_v6 = vrot.slane %v1116_v4, 4  ;;  %v1221_v8 = vrot.slane %v1216_v5, 4  ;;  %v1218_v9 = vpop.permute.xlu2 %1217 }
 0x2a8   : > { %v1222_v10 = vrot.slane %v1218_v9, 4 }
 0x2a9   : > { %v1127_v11 = vsel %vm3970_vm8, %v1116_v4, %v1123_v6  ;;  %v1225_v13 = vsel %vm600_vm3, %v1216_v5, %v1221_v8  ;;  %vm3973_vm8 = vcmask 1031168   ;;  %v2699_v2 = vld [vmem:[#allocation2 + $0x50] sm:$0xf]  ;;  %v3048_v5 = vld [vmem:[#allocation2 + $0x54] sm:$0xf] }
 0x2aa   : > { %1135 = vst.msk [vmem:[#allocation2 + $0x20] sm:$0xff] %vm3378_vm14, %v1127_v11  ;;  %v1226_v17 = vsel %vm600_vm3, %v1218_v9, %v1222_v10  ;;  %v2715_v14 = vld [vmem:[#allocation2 + $0x70] sm:$0xf]  ;;  %v3052_v18 = vld [vmem:[#allocation2 + $0x74] sm:$0xf] }
 0x2ab   : > { %1233 = vst.msk [vmem:[#allocation2 + $0xb0] sm:$0xff] %vm3371_vm11, %v1225_v13  ;;  %v2716_v19 = vor.u32 %v3053_v15, %v2715_v14  ;;  %v2720_v20 = vor.u32 %v3052_v18, %v2717_v16  ;;  %v2763_v4 = vld [vmem:[#allocation2 + $0xd0] sm:$0xf]  ;;  %v2691_v15 = vld [vmem:[#allocation2 + $0x40] sm:$0xf] }
 0x2ac   : > { %1234 = vst.msk [vmem:[#allocation2 + $0xb8] sm:$0xff] %vm3371_vm11, %v1226_v17  ;;  %v3063_v16 = vld [vmem:[#allocation2 + $0xc4] sm:$0xf0]  ;;  %v3046_v17 = vld [vmem:[#allocation2 + $0x44] sm:$0xf] }
 0x2ad   : > { %1591 = vmatpush.bf16.msra.mxu0 %v2716_v19  ;;  %1648 = vmatpush.bf16.msra.mxu3 %v2720_v20  ;;  %v3047_v19 = vld [vmem:[#allocation2 + $0x44] sm:$0xf0]  ;;  %v2755_v20 = vld [vmem:[#allocation2 + $0xc0] sm:$0xf]  ;;  %v2696_v26 = vor.u32 %v3046_v17, %v2693_v25 }
 0x2ae   : > { %v1242_v23 = vpop.permute.xlu0 %1241  ;;  %v1266_v24 = vpop.permute.xlu1 %1265 }
 0x2af   : > { %v1246_v27 = vrot.slane %v1242_v23, 4  ;;  %v1270_v28 = vrot.slane %v1266_v24, 4  ;;  %v1194_v29 = vpop.permute.xlu2 %1193 }
 0x2b0   : > { %v1198_v34 = vrot.slane %v1194_v29, 4 }
 0x2b1   : > { %v1250_v35 = vsel %vm3971_vm1, %v1242_v23, %v1246_v27  ;;  %v1274_v36 = vsel %vm654_vm9, %v1266_v24, %v1270_v28  ;;  %1592 = vmatpush.bf16.msra.mxu0 %v2708_v30  ;;  %1649 = vmatpush.bf16.msra.mxu3 %v2712_v32  ;;  %vm3974_vm1 = vcmask 883712   ;;  %v2692_v23 = vor.u32 %v3047_v19, %v2691_v15  ;;  %v3038_v15 = vld [vmem:[#allocation2 + $0x4] sm:$0xf] }
 0x2b2   : > { %1258 = vst.msk [vmem:[#allocation2 + $0xd8] sm:$0xff] %vm3339_vm0, %v1250_v35  ;;  %v1202_v37 = vsel %vm573_vm5, %v1194_v29, %v1198_v34  ;;  %v2756_v24 = vor.u32 %v3063_v16, %v2755_v20  ;;  %v2747_v28 = vld [vmem:[#allocation2 + $0xb0] sm:$0xf] }
 0x2b3   : > { %1282 = vst.msk [vmem:[#allocation2 + $0xf8] sm:$0xff] %vm3323_vm10, %v1274_v36  ;;  %v3061_v29 = vld [vmem:[#allocation2 + $0xb4] sm:$0xf0]  ;;  %v2683_v35 = vld [vmem:[#allocation2 + $0x30] sm:$0xf] }
 0x2b4   : > { %1210 = vst.msk [vmem:[#allocation2 + $0x98] sm:$0xff] %vm3408_vm15, %v1202_v37  ;;  %v2748_v37 = vor.u32 %v3061_v29, %v2747_v28 }
 0x2b6   : > { %v1122_v38 = vpop.permute.xlu0 %1121  ;;  %v1146_v39 = vpop.permute.xlu1 %1145 }
 0x2b7   : > { %v1126_v40 = vrot.slane %v1122_v38, 4  ;;  %v1150_v41 = vrot.slane %v1146_v39, 4  ;;  %v1288_v42 = vpop.permute.xlu2 %1287 }
 0x2b8   : > { %v1293_v43 = vrot.slane %v1288_v42, 4 }
 0x2b9   : > { %v1130_v45 = vsel %vm3972_vm2, %v1122_v38, %v1126_v40  ;;  %v1154_v46 = vsel %vm3973_vm8, %v1146_v39, %v1150_v41  ;;  %v3065_v62 = vld [vmem:[#allocation2 + $0xd4] sm:$0xf0]  ;;  %vm3975_vm8 = vmmov %vm3974_vm1  ;;  %v3044_v38 = vld [vmem:[#allocation2 + $0x34] sm:$0xf] }
 0x2ba   : > { %1138 = vst.msk [vmem:[#allocation2 + $0x38] sm:$0xff] %vm3378_vm14, %v1130_v45  ;;  %v1297_v47 = vsel %vm3974_vm1, %v1288_v42, %v1293_v43  ;;  %v3069_v50 = vld [vmem:[#allocation2 + $0xf4] sm:$0xf0]  ;;  %v2764_v11 = vor.u32 %v3065_v62, %v2763_v4 }
 0x2bb   : > { %1162 = vst.msk [vmem:[#allocation2 + $0x58] sm:$0xff] %vm3331_vm13, %v1154_v46  ;;  %v2780_v51 = vor.u32 %v3069_v50, %v2779_v49  ;;  %v2675_v46 = vld [vmem:[#allocation2 + $0x20] sm:$0xf]  ;;  %v3057_v62 = vld [vmem:[#allocation2 + $0x94] sm:$0xf0] }
 0x2bc   : > { %1305 = vst.msk [vmem:[#allocation2 + $0x110] sm:$0xff] %vm3422_vm12, %v1297_v47  ;;  %v2739_v47 = vld [vmem:[#allocation2 + $0xa0] sm:$0xf] }
 0x2bd   : > { %1610 = vmatpush.bf16.msra.mxu1 %v2780_v51 }
 0x2be   : > { %v1214_v53 = vpop.permute.xlu0 %1213  ;;  %v1118_v54 = vpop.permute.xlu1 %1117 }
 0x2bf   : > { %v1220_v56 = vrot.slane %v1214_v53, 4  ;;  %v1124_v57 = vrot.slane %v1118_v54, 4  ;;  %v1286_v58 = vpop.permute.xlu2 %1285 }
 0x2c0   : > { %v1292_v60 = vrot.slane %v1286_v58, 4 }
 0x2c1   : > { %v1224_v0 = vsel %vm600_vm3, %v1214_v53, %v1220_v56  ;;  %v1128_v1 = vsel %vm3972_vm2, %v1118_v54, %v1124_v57  ;;  %1611 = vmatpush.bf16.msra.mxu1 %v2772_v59  ;;  %v3045_v27 = vld [vmem:[#allocation2 + $0x34] sm:$0xf0]  ;;  %v2685_v34 = vld [vmem:[#allocation2 + $0x38] sm:$0xf0]  ;;  %v3042_v53 = vld [vmem:[#allocation2 + $0x24] sm:$0xf] }
 0x2c2   : > { %1232 = vst.msk [vmem:[#allocation2 + $0xa8] sm:$0xff] %vm3371_vm11, %v1224_v0  ;;  %v1296_v6 = vsel %vm3975_vm8, %v1286_v58, %v1292_v60  ;;  %v3049_v8 = vld [vmem:[#allocation2 + $0x54] sm:$0xf0]  ;;  %v2701_v9 = vld [vmem:[#allocation2 + $0x58] sm:$0xf0]  ;;  %v2684_v36 = vor.u32 %v3045_v27, %v2683_v35  ;;  %v2688_v39 = vor.u32 %v3044_v38, %v2685_v34  ;;  %vm3976_vm2 = vmmov %vm3974_vm1  ;;  %vm3977_vm8 = vcmask 261120  }
 0x2c3   : > { %1136 = vst.msk [vmem:[#allocation2 + $0x28] sm:$0xff] %vm3378_vm14, %v1128_v1  ;;  %v2700_v10 = vor.u32 %v3049_v8, %v2699_v2  ;;  %v2704_v13 = vor.u32 %v3048_v5, %v2701_v9  ;;  %v2667_v58 = vld [vmem:[#allocation2 + $0x10] sm:$0xf]  ;;  %v2669_v59 = vld [vmem:[#allocation2 + $0x18] sm:$0xf0] }
 0x2c4   : > { %1304 = vst.msk [vmem:[#allocation2 + $0x108] sm:$0xff] %vm3422_vm12, %v1296_v6  ;;  %v2668_v0 = vor.u32 %v3041_v55, %v2667_v58  ;;  %v3040_v2 = vld [vmem:[#allocation2 + $0x14] sm:$0xf]  ;;  %v3039_v5 = vld [vmem:[#allocation2 + $0x4] sm:$0xf0] }
 0x2c5   : > { %1593 = vmatpush.bf16.msra.mxu0 %v2700_v10  ;;  %1612 = vmatpush.bf16.msra.mxu1 %v2764_v11  ;;  %v2672_v4 = vor.u32 %v3040_v2, %v2669_v59  ;;  %v2661_v6 = vld [vmem:[#allocation2 + $0x8] sm:$0xf0]  ;;  %v2781_v8 = vld [vmem:[#allocation2 + $0xf8] sm:$0xf0]  ;;  %v2635_v9 = vld [vmem:[%s3937_s5] sm:$0xf] }
 0x2c6   : > { %1650 = vmatpush.bf16.msra.mxu3 %v2704_v13  ;;  %v1188_v14 = vpop.permute.xlu0 %1187  ;;  %v1192_v18 = vpop.permute.xlu1 %1191  ;;  %v3033_v10 = vld [vmem:[%s3937_s5 + $0x8] sm:$0xf0]  ;;  %v2659_v13 = vld [vmem:[#allocation2] sm:$0xf]  ;;  %v2664_v19 = vor.u32 %v3038_v15, %v2661_v6  ;;  %v3072_v27 = vld [vmem:[#allocation2 + $0x114] sm:$0xf] }
 0x2c7   : > { %v1195_v21 = vrot.slane %v1188_v14, 4  ;;  %v1197_v22 = vrot.slane %v1192_v18, 4  ;;  %v2660_v17 = vor.u32 %v3039_v5, %v2659_v13  ;;  %v2647_v58 = vld [vmem:[%s3937_s5 + $0x18] sm:$0xf]  ;;  %v3036_v59 = vld [vmem:[%s3937_s5 + $0x20] sm:$0xf0] }
 0x2c8   : > { %v2649_v2 = vld [vmem:[%s3937_s5 + $0x24] sm:$0xf0]  ;;  %v3037_v13 = vld [vmem:[%s3937_s5 + $0x28] sm:$0xf0] }
 0x2c9   : > { %v1199_v30 = vsel %vm573_vm5, %v1188_v14, %v1195_v21  ;;  %v1201_v32 = vsel %vm573_vm5, %v1192_v18, %v1197_v22  ;;  %1594 = vmatpush.bf16.msra.mxu0 %v2692_v23  ;;  %1613 = vmatpush.bf16.msra.mxu1 %v2756_v24  ;;  %v3059_v41 = vld [vmem:[#allocation2 + $0xa4] sm:$0xf0]  ;;  %v3068_v14 = vld [vmem:[#allocation2 + $0xf4] sm:$0xf]  ;;  %v3066_v18 = vld [vmem:[#allocation2 + $0xe4] sm:$0xf]  ;;  %v2636_v21 = vor.u32 %v3033_v10, %v2635_v9 }
 0x2ca   : > { %1207 = vst.msk [vmem:[#allocation2 + $0x80] sm:$0xff] %vm3408_vm15, %v1199_v30  ;;  %1651 = vmatpush.bf16.msra.mxu3 %v2696_v26  ;;  %v3043_v40 = vld [vmem:[#allocation2 + $0x24] sm:$0xf0]  ;;  %v2677_v42 = vld [vmem:[#allocation2 + $0x28] sm:$0xf0]  ;;  %v2740_v52 = vor.u32 %v3059_v41, %v2739_v47  ;;  %v2784_v20 = vor.u32 %v3068_v14, %v2781_v8 }
 0x2cb   : > { %1209 = vst.msk [vmem:[#allocation2 + $0x90] sm:$0xff] %vm3408_vm15, %v1201_v32  ;;  %v2676_v51 = vor.u32 %v3043_v40, %v2675_v46  ;;  %v2680_v54 = vor.u32 %v3042_v53, %v2677_v42  ;;  %v2795_v22 = vld [vmem:[#allocation2 + $0x110] sm:$0xf]  ;;  %v3032_v23 = vld [vmem:[%s3937_s5 + $0x4] sm:$0xf] }
 0x2cc   : > { %v2637_v24 = vld [vmem:[%s3937_s5 + $0xc] sm:$0xf0]  ;;  %v3064_v40 = vld [vmem:[#allocation2 + $0xd4] sm:$0xf]  ;;  %v2757_v41 = vld [vmem:[#allocation2 + $0xc8] sm:$0xf0] }
 0x2cd   : > { %1595 = vmatpush.bf16.msra.mxu0 %v2684_v36  ;;  %1614 = vmatpush.bf16.msra.mxu1 %v2748_v37  ;;  %v2773_v36 = vld [vmem:[#allocation2 + $0xe8] sm:$0xf0]  ;;  %v2640_v38 = vor.u32 %v3032_v23, %v2637_v24  ;;  %v3034_v46 = vld [vmem:[%s3937_s5 + $0x10] sm:$0xf0]  ;;  %v3062_v53 = vld [vmem:[#allocation2 + $0xc4] sm:$0xf] }
 0x2ce   : > { %1652 = vmatpush.bf16.msra.mxu3 %v2688_v39  ;;  %v1290_v43 = vpop.permute.xlu0 %1289  ;;  %v1190_v45 = vpop.permute.xlu1 %1189  ;;  %v2776_v37 = vor.u32 %v3066_v18, %v2773_v36  ;;  %v2765_v39 = vld [vmem:[#allocation2 + $0xd8] sm:$0xf0]  ;;  %v2760_v55 = vor.u32 %v3062_v53, %v2757_v41 }
 0x2cf   : > { %v1294_v49 = vrot.slane %v1290_v43, 4  ;;  %v1196_v50 = vrot.slane %v1190_v45, 4  ;;  %v2768_v42 = vor.u32 %v3064_v40, %v2765_v39  ;;  %v2733_v9 = vld [vmem:[#allocation2 + $0x98] sm:$0xf0] }
 0x2d1   : > { %v1298_v56 = vsel %vm3974_vm1, %v1290_v43, %v1294_v49  ;;  %v1200_v57 = vsel %vm573_vm5, %v1190_v45, %v1196_v50  ;;  %1596 = vmatpush.bf16.msra.mxu0 %v2676_v51  ;;  %1615 = vmatpush.bf16.msra.mxu1 %v2740_v52  ;;  %v2723_v29 = vld [vmem:[#allocation2 + $0x80] sm:$0xf]  ;;  %v3071_v43 = vld [vmem:[#allocation2 + $0x104] sm:$0xf0]  ;;  %v2789_v50 = vld [vmem:[#allocation2 + $0x108] sm:$0xf0] }
 0x2d2   : > { %1306 = vst.msk [vmem:[#allocation2 + $0x118] sm:$0xff] %vm3422_vm12, %v1298_v56  ;;  %1653 = vmatpush.bf16.msra.mxu3 %v2680_v54  ;;  %v2731_v60 = vld [vmem:[#allocation2 + $0x90] sm:$0xf]  ;;  %v2643_v45 = vld [vmem:[%s3937_s5 + $0x8] sm:$0xf]  ;;  %vm3978_vm1 = vmmov %vm3977_vm8 }
 0x2d3   : > { %1208 = vst.msk [vmem:[#allocation2 + $0x88] sm:$0xff] %vm3408_vm15, %v1200_v57  ;;  %v2732_v1 = vor.u32 %v3057_v62, %v2731_v60  ;;  %v2644_v54 = vor.u32 %v3034_v46, %v2643_v45  ;;  %v3060_v56 = vld [vmem:[#allocation2 + $0xb4] sm:$0xf]  ;;  %v2749_v57 = vld [vmem:[#allocation2 + $0xb8] sm:$0xf0]  ;;  %v2648_v62 = vor.u32 %v3036_v59, %v2647_v58 }
 0x2d4   : > { %v2752_v60 = vor.u32 %v3060_v56, %v2749_v57  ;;  %v3056_v8 = vld [vmem:[#allocation2 + $0x94] sm:$0xf] }
 0x2d5   : > { %1597 = vmatpush.bf16.msra.mxu0 %v2668_v0  ;;  %1616 = vmatpush.bf16.msra.mxu1 %v2732_v1  ;;  %v2741_v0 = vld [vmem:[#allocation2 + $0xa8] sm:$0xf0]  ;;  %v3035_v1 = vld [vmem:[%s3937_s5 + $0x1c] sm:$0xf]  ;;  %v2736_v10 = vor.u32 %v3056_v8, %v2733_v9 }
 0x2d6   : > { %1654 = vmatpush.bf16.msra.mxu3 %v2672_v4  ;;  %v1284_v11 = vpop.permute.xlu1 %1283  ;;  %v3058_v4 = vld [vmem:[#allocation2 + $0xa4] sm:$0xf]  ;;  %v2652_v6 = vor.u32 %v3035_v1, %v2649_v2 }
 0x2d7   : > { %v1291_v16 = vrot.slane %v1284_v11, 4  ;;  %v2744_v5 = vor.u32 %v3058_v4, %v2741_v0 }
 0x2d9   : > { %v1295_v25 = vsel %vm3976_vm2, %v1284_v11, %v1291_v16  ;;  %1598 = vmatpush.bf16.msra.mxu0 %v2660_v17  ;;  %v3073_v26 = vld [vmem:[#allocation2 + $0x114] sm:$0xf0]  ;;  %v2797_v28 = vld [vmem:[#allocation2 + $0x118] sm:$0xf0]  ;;  %v2655_v11 = vld [vmem:[%s3937_s5 + $0x20] sm:$0xf] }
 0x2da   : > { %1303 = vst.msk [vmem:[#allocation2 + $0x100] sm:$0xff] %vm3422_vm12, %v1295_v25  ;;  %1655 = vmatpush.bf16.msra.mxu3 %v2664_v19  ;;  %v3055_v30 = vld [vmem:[#allocation2 + $0x84] sm:$0xf0]  ;;  %v2796_v32 = vor.u32 %v3073_v26, %v2795_v22  ;;  %v2800_v34 = vor.u32 %v3072_v27, %v2797_v28  ;;  %v2725_v15 = vld [vmem:[#allocation2 + $0x88] sm:$0xf0]  ;;  %v2656_v17 = vor.u32 %v3037_v13, %v2655_v11  ;;  %vm3979_vm2 = vmmov %vm3978_vm1  ;;  %v1368_v27 = vpop.permute.xlu0 %1367 }
 0x2db   : > { %v2724_v35 = vor.u32 %v3055_v30, %v2723_v29  ;;  %v3054_v16 = vld [vmem:[#allocation2 + $0x84] sm:$0xf]  ;;  %v1358_v29 = vpop.permute.xlu2 %1357 }
 0x2dc   : > { %1599 = vmatmul.bf16.vlgmr.msra.gmra.mxu0 %v2636_v21  ;;  %1635 = vmatpush.bf16.msra.mxu2 %v2796_v32  ;;  %v2728_v14 = vor.u32 %v3054_v16, %v2725_v15 }
 0x2dd   : > { %1667 = vmatpush.bf16.msrb.mxu0 %v2784_v20  ;;  %1656 = vmatmul.bf16.vlgmr.msra.gmra.mxu3 %v2636_v21 }
 0x2de   : > { %1617 = vmatpush.bf16.msra.mxu1 %v2724_v35  ;;  %v1373_v9 = vpop.permute.xlu1 %1372 }
 0x2e1   : > { %1668 = vmatpush.bf16.msrb.mxu0 %v2776_v37  ;;  %1618 = vmatmul.bf16.vlgmr.msra.gmra.mxu1 %v2640_v38  ;;  %v2787_v47 = vld [vmem:[#allocation2 + $0x100] sm:$0xf]  ;;  %v3070_v49 = vld [vmem:[#allocation2 + $0x104] sm:$0xf] }
 0x2e2   : > { %1692 = vmatpush.bf16.msrb.mxu1 %v2800_v34  ;;  %v2788_v51 = vor.u32 %v3071_v43, %v2787_v47  ;;  %v2792_v52 = vor.u32 %v3070_v49, %v2789_v50 }
 0x2e4   : > { %1636 = vmatpush.bf16.msra.mxu2 %v2788_v51 }
 0x2e5   : > { %1669 = vmatpush.bf16.msrb.mxu0 %v2768_v42  ;;  %v1363_v42 = vpop.permute.xlu0 %1362 }
 0x2e6   : > { %1693 = vmatpush.bf16.msrb.mxu1 %v2792_v52 }
 0x2e7   : > { %2801 = vmatmul.msk.bf16.vlgmr.msra.gmra.mxu2 %vm3977_vm8, %v2644_v54  ;;  %vm3980_vm8 = vmmov %vm3978_vm1 }
 0x2e9   : > { %1670 = vmatpush.bf16.msrb.mxu0 %v2760_v55 }
 0x2ec   : > { %1604 = vmatmul.bf16.gmra.mxu0 %v2648_v62 }
 0x2ed   : > { %1671 = vmatpush.bf16.msrb.mxu0 %v2752_v60  ;;  %1661 = vmatmul.bf16.gmra.mxu3 %v2648_v62 }
 0x2f1   : > { %1672 = vmatpush.bf16.msrb.mxu0 %v2744_v5  ;;  %1623 = vmatmul.bf16.gmra.mxu1 %v2652_v6 }
 0x2f5   : > { %1673 = vmatpush.bf16.msrb.mxu0 %v2736_v10 }
 0x2f7   : > { %2802 = vmatmul.msk.bf16.gmra.mxu2 %vm3978_vm1, %v2656_v17  ;;  %vm3982_vm1 = vcmask 900096  }
 0x2f9   : > { %1674 = vmatpush.bf16.msrb.mxu0 %v2728_v14 }
 0x2fc   : > { %1675 = vmatmul.bf16.vlgmr.msrb.gmra.mxu0 %v2640_v38 }
 0x301   : > { %2803 = vmatmul.msk.bf16.vlgmr.msrb.gmra.mxu1 %vm3979_vm2, %v2644_v54  ;;  %vm3983_vm2 = vmmov %vm3982_vm1 }
 0x30c   : > { %1680 = vmatmul.bf16.gmra.mxu0 %v2652_v6 }
 0x311   : > { %2804 = vmatmul.msk.bf16.gmra.mxu1 %vm3980_vm8, %v2656_v17  ;;  %vm3984_vm8 = vcmask 1039360  }
 0x359   : > { %v1600_v18 = vpop.f32.mrf.mxu0 }
 0x35a   : > { %v1601_v30 = vadd.f32 %v1600_v18, %v1358_v29 }
 0x35e   : > { %v1619_v19 = vpop.f32.mrf.mxu1 }
 0x35f   : > { %v1620_v34 = vadd.f32 %v1619_v19, %v1601_v30 }
 0x360   : > { %v1657_v24 = vpop.f32.mrf.mxu3 }
 0x361   : > { %v1602_v20 = vpop.f32.mrf.mxu0  ;;  %v1658_v35 = vadd.f32 %v1657_v24, %v1358_v29  ;;  %v1963_v29 = vld [vmem:[%s3940_s8 + $0x10] sm:$0xff] }
 0x362   : > { %v1603_v43 = vadd.f32 %v1602_v20, %v1363_v42 }
 0x366   : > { %v1621_v21 = vpop.f32.mrf.mxu1 }
 0x367   : > { %v1622_v49 = vadd.f32 %v1621_v21, %v1603_v43 }
 0x368   : > { %v1659_v36 = vpop.f32.mrf.mxu3 }
 0x369   : > { %v1605_v22 = vpop.f32.mrf.mxu0  ;;  %v1660_v50 = vadd.f32 %v1659_v36, %v1363_v42 }
 0x36a   : > { %v1638_v26 = vpop.f32.mrf.mxu2  ;;  %v1606_v58 = vadd.f32 %v1605_v22, %v1368_v27 }
 0x36b   : > { %v1639_v37 = vadd.f32 %v1638_v26, %v1620_v34 }
 0x36d   : > { %v1705_v45 = vmax.f32 %v1639_v37, 0.0 }
 0x36e   : > { %v1624_v23 = vpop.f32.mrf.mxu1 }
 0x36f   : > { %v1625_v0 = vadd.f32 %v1624_v23, %v1606_v58 }
 0x370   : > { %v1662_v54 = vpop.f32.mrf.mxu3 }
 0x371   : > { %v1607_v25 = vpop.f32.mrf.mxu0  ;;  %v1663_v1 = vadd.f32 %v1662_v54, %v1368_v27  ;;  %v1964_v27 = vld [vmem:[%s3940_s8 + $0x18] sm:$0xff] }
 0x372   : > { %v1640_v39 = vpop.f32.mrf.mxu2  ;;  %v1608_v11 = vadd.f32 %v1607_v25, %v1373_v9 }
 0x373   : > { %v1641_v52 = vadd.f32 %v1640_v39, %v1622_v49 }
 0x375   : > { %v1707_v59 = vmax.f32 %v1641_v52, 0.0 }
 0x376   : > { %v1626_v28 = vpop.f32.mrf.mxu1 }
 0x377   : > { %v1627_v14 = vadd.f32 %v1626_v28, %v1608_v11  ;;  %v1962_v28 = vld [vmem:[%s3940_s8 + $0x8] sm:$0xff] }
 0x378   : > { %v1664_v10 = vpop.f32.mrf.mxu3 }
 0x379   : > { %v1676_v32 = vpop.f32.mrf.mxu0  ;;  %v1665_v18 = vadd.f32 %v1664_v10, %v1373_v9 }
 0x37a   : > { %v1677_v38 = vadd.f32 %v1676_v32, %v1658_v35  ;;  %v1643_v57 = vpop.f32.mrf.mxu2 }
 0x37b   : > { %v1644_v4 = vadd.f32 %v1643_v57, %v1625_v0 }
 0x37d   : > { %v1709_v13 = vmax.f32 %v1644_v4, 0.0 }
 0x37e   : > { %v1695_v40 = vpop.f32.mrf.mxu1 }
 0x37f   : > { %v1696_v41 = vadd.f32 %v1695_v40, %v1677_v38 }
 0x381   : > { %v1706_v46 = vmax.f32 %v1696_v41, 0.0  ;;  %v1678_v47 = vpop.f32.mrf.mxu0 }
 0x382   : > { %v1679_v53 = vadd.f32 %v1678_v47, %v1660_v50  ;;  %v1645_v16 = vpop.f32.mrf.mxu2 }
 0x383   : > { %v3696_v51 = vpack.c.bf16 %v1706_v46, %v1705_v45  ;;  %v1646_v20 = vadd.f32 %v1645_v16, %v1627_v14 }
 0x385   : > { %1717 = vst.msk [vmem:[#allocation2] sm:$0xff] %vm3250_vm4, %v3696_v51  ;;  %1845 = vrot.lane.b32.xlu0 %v3696_v51, %s3157_s28  ;;  %1869 = vrot.lane.b32.xlu1 %v3696_v51, %s3158_s29  ;;  %v1711_v24 = vmax.f32 %v1646_v20, 0.0 }
 0x386   : > { %1773 = vrot.lane.b32.xlu2 %v3696_v51, %s3159_s11  ;;  %v1697_v55 = vpop.f32.mrf.mxu1 }
 0x387   : > { %v1698_v56 = vadd.f32 %v1697_v55, %v1679_v53 }
 0x389   : > { %v1708_v60 = vmax.f32 %v1698_v56, 0.0  ;;  %v1681_v62 = vpop.f32.mrf.mxu0 }
 0x38a   : > { %v1682_v5 = vadd.f32 %v1681_v62, %v1663_v1 }
 0x38b   : > { %v1714_v2 = vpack.c.bf16 %v1708_v60, %v1707_v59 }
 0x38d   : > { %1718 = vst.msk [vmem:[#allocation2 + $0x8] sm:$0xff] %vm3250_vm4, %v1714_v2  ;;  %1725 = vrot.lane.b32.xlu0 %v3696_v51, %s3162_s14  ;;  %1749 = vrot.lane.b32.xlu1 %v3696_v51, %s3160_s12 }
 0x38e   : > { %1871 = vrot.lane.b32.xlu2 %v1714_v2, %s3158_s29  ;;  %v1700_v6 = vpop.f32.mrf.mxu1 }
 0x38f   : > { %v1701_v8 = vadd.f32 %v1700_v6, %v1682_v5 }
 0x391   : > { %v1710_v15 = vmax.f32 %v1701_v8, 0.0  ;;  %v1683_v17 = vpop.f32.mrf.mxu0 }
 0x392   : > { %v1684_v21 = vadd.f32 %v1683_v17, %v1665_v18 }
 0x393   : > { %v1715_v19 = vpack.c.bf16 %v1710_v15, %v1709_v13 }
 0x395   : > { %1719 = vst.msk [vmem:[#allocation2 + $0x10] sm:$0xff] %vm3250_vm4, %v1715_v19  ;;  %1775 = vrot.lane.b32.xlu0 %v1714_v2, %s3159_s11  ;;  %1847 = vrot.lane.b32.xlu1 %v1714_v2, %s3157_s28 }
 0x396   : > { %1751 = vrot.lane.b32.xlu2 %v1714_v2, %s3160_s12  ;;  %v1702_v22 = vpop.f32.mrf.mxu1 }
 0x397   : > { %v1703_v23 = vadd.f32 %v1702_v22, %v1684_v21 }
 0x399   : > { %v1712_v25 = vmax.f32 %v1703_v23, 0.0 }
 0x39b   : > { %v1716_v26 = vpack.c.bf16 %v1712_v25, %v1711_v24 }
 0x39d   : > { %1720 = vst.msk [vmem:[#allocation2 + $0x18] sm:$0xff] %vm3250_vm4, %v1716_v26  ;;  %1873 = vrot.lane.b32.xlu0 %v1715_v19, %s3158_s29  ;;  %1777 = vrot.lane.b32.xlu1 %v1715_v19, %s3159_s11  ;;  %vm3981_vm4 = vcmask 1031168  }
 0x39e   : > { %1849 = vrot.lane.b32.xlu2 %v1715_v19, %s3157_s28 }
 0x3a5   : > { %1753 = vrot.lane.b32.xlu0 %v1715_v19, %s3160_s12  ;;  %1825 = vrot.lane.b32.xlu1 %v1715_v19, %s3161_s13 }
 0x3a6   : > { %1729 = vrot.lane.b32.xlu2 %v1715_v19, %s3162_s14 }
 0x3ad   : > { %1823 = vrot.lane.b32.xlu0 %v1714_v2, %s3161_s13  ;;  %1875 = vrot.lane.b32.xlu1 %v1716_v26, %s3158_s29 }
 0x3ae   : > { %1779 = vrot.lane.b32.xlu2 %v1716_v26, %s3159_s11 }
 0x3b5   : > { %1851 = vrot.lane.b32.xlu0 %v1716_v26, %s3157_s28  ;;  %1755 = vrot.lane.b32.xlu1 %v1716_v26, %s3160_s12 }
 0x3b6   : > { %1821 = vrot.lane.b32.xlu2 %v3696_v51, %s3161_s13 }
 0x3bd   : > { %1731 = vrot.lane.b32.xlu0 %v1716_v26, %s3162_s14  ;;  %1727 = vrot.lane.b32.xlu1 %v1714_v2, %s3162_s14 }
 0x3be   : > { %1897 = vrot.lane.b32.xlu2 %v1715_v19, %s3164_s16 }
 0x3c5   : > { %1797 = vrot.lane.b32.xlu0 %v3696_v51, %s3163_s15  ;;  %1801 = vrot.lane.b32.xlu1 %v1715_v19, %s3163_s15 }
 0x3c6   : > { %1827 = vrot.lane.b32.xlu2 %v1716_v26, %s3161_s13 }
 0x3cd   : > { %1899 = vrot.lane.b32.xlu0 %v1716_v26, %s3164_s16  ;;  %1799 = vrot.lane.b32.xlu1 %v1714_v2, %s3163_s15 }
 0x3ce   : > { %1803 = vrot.lane.b32.xlu2 %v1716_v26, %s3163_s15 }
 0x3d5   : > { %1967 = vperm.xlu0 %3145, %v1961_v33   ;;  %1893 = vrot.lane.b32.xlu1 %v3696_v51, %s3164_s16 }
 0x3d6   : > { %1895 = vrot.lane.b32.xlu2 %v1714_v2, %s3164_s16 }
 0x3dd   : > { %1982 = vperm.xlu0 %3145, %v1964_v27   ;;  %1972 = vperm.xlu1 %3146, %v1962_v28  }
 0x3de   : > { %1977 = vperm.xlu2 %3147, %v1963_v29  }
 0x3e0   : > { %v1774_v30 = vpop.permute.xlu2 %1773 }
 0x3e1   : > { %v1781_v32 = vrot.slane %v1774_v30, 4 }
 0x3e3   : > { %v1785_v34 = vsel %vm546_vm6, %v1774_v30, %v1781_v32 }
 0x3e4   : > { %1793 = vst.msk [vmem:[#allocation2 + $0x60] sm:$0xff] %vm3315_vm7, %v1785_v34 }
 0x3e8   : > { %v1872_v35 = vpop.permute.xlu2 %1871 }
 0x3e9   : > { %v1878_v36 = vrot.slane %v1872_v35, 4 }
 0x3eb   : > { %v1882_v37 = vsel %vm654_vm9, %v1872_v35, %v1878_v36 }
 0x3ec   : > { %1890 = vst.msk [vmem:[#allocation2 + $0xe8] sm:$0xff] %vm3323_vm10, %v1882_v37 }
 0x3f0   : > { %v1752_v38 = vpop.permute.xlu2 %1751 }
 0x3f1   : > { %v1758_v39 = vrot.slane %v1752_v38, 4 }
 0x3f3   : > { %v1762_v40 = vsel %vm3981_vm4, %v1752_v38, %v1758_v39  ;;  %v2879_v39 = vld [vmem:[#allocation2 + $0x60] sm:$0xf] }
 0x3f4   : > { %1770 = vst.msk [vmem:[#allocation2 + $0x48] sm:$0xff] %vm3331_vm13, %v1762_v40  ;;  %v3092_v40 = vld [vmem:[#allocation2 + $0x64] sm:$0xf] }
 0x3f7   : > { %v1846_v41 = vpop.permute.xlu0 %1845  ;;  %v1870_v42 = vpop.permute.xlu1 %1869 }
 0x3f8   : > { %v1853_v43 = vrot.slane %v1846_v41, 4  ;;  %v1877_v45 = vrot.slane %v1870_v42, 4  ;;  %v1850_v46 = vpop.permute.xlu2 %1849 }
 0x3f9   : > { %v1855_v47 = vrot.slane %v1850_v46, 4 }
 0x3fa   : > { %v1857_v49 = vsel %vm3982_vm1, %v1846_v41, %v1853_v43  ;;  %v1881_v50 = vsel %vm654_vm9, %v1870_v42, %v1877_v45  ;;  %vm3985_vm1 = vmmov %vm3984_vm8 }
 0x3fb   : > { %1865 = vst.msk [vmem:[#allocation2 + $0xc0] sm:$0xff] %vm3339_vm0, %v1857_v49  ;;  %v1859_v51 = vsel %vm3983_vm2, %v1850_v46, %v1855_v47 }
 0x3fc   : > { %1889 = vst.msk [vmem:[#allocation2 + $0xe0] sm:$0xff] %vm3323_vm10, %v1881_v50 }
 0x3fd   : > { %1867 = vst.msk [vmem:[#allocation2 + $0xd0] sm:$0xff] %vm3339_vm0, %v1859_v51 }
 0x3ff   : > { %v1726_v52 = vpop.permute.xlu0 %1725  ;;  %v1750_v53 = vpop.permute.xlu1 %1749 }
 0x400   : > { %v1733_v54 = vrot.slane %v1726_v52, 4  ;;  %v1757_v55 = vrot.slane %v1750_v53, 4  ;;  %v1730_v56 = vpop.permute.xlu2 %1729 }
 0x401   : > { %v1735_v57 = vrot.slane %v1730_v56, 4 }
 0x402   : > { %v1737_v58 = vsel %vm3984_vm8, %v1726_v52, %v1733_v54  ;;  %v1761_v59 = vsel %vm3981_vm4, %v1750_v53, %v1757_v55  ;;  %vm3986_vm8 = vmmov %vm3981_vm4 }
 0x403   : > { %1745 = vst.msk [vmem:[#allocation2 + $0x20] sm:$0xff] %vm3378_vm14, %v1737_v58  ;;  %v1739_v60 = vsel %vm3985_vm1, %v1730_v56, %v1735_v57 }
 0x404   : > { %1769 = vst.msk [vmem:[#allocation2 + $0x40] sm:$0xff] %vm3331_vm13, %v1761_v59  ;;  %v3106_v61 = vld [vmem:[#allocation2 + $0xd4] sm:$0xf] }
 0x405   : > { %1747 = vst.msk [vmem:[#allocation2 + $0x30] sm:$0xff] %vm3378_vm14, %v1739_v60 }
 0x407   : > { %v1776_v62 = vpop.permute.xlu0 %1775  ;;  %v1848_v0 = vpop.permute.xlu1 %1847 }
 0x408   : > { %v1782_v1 = vrot.slane %v1776_v62, 4  ;;  %v1854_v2 = vrot.slane %v1848_v0, 4  ;;  %v1780_v4 = vpop.permute.xlu2 %1779 }
 0x409   : > { %v1784_v5 = vrot.slane %v1780_v4, 4 }
 0x40a   : > { %v1786_v6 = vsel %vm546_vm6, %v1776_v62, %v1782_v1  ;;  %v1858_v8 = vsel %vm3983_vm2, %v1848_v0, %v1854_v2  ;;  %v2943_v0 = vld [vmem:[#allocation2 + $0xe0] sm:$0xf] }
 0x40b   : > { %1794 = vst.msk [vmem:[#allocation2 + $0x68] sm:$0xff] %vm3315_vm7, %v1786_v6  ;;  %v1788_v9 = vsel %vm546_vm6, %v1780_v4, %v1784_v5  ;;  %v3109_v4 = vld [vmem:[#allocation2 + $0xe4] sm:$0xf0] }
 0x40c   : > { %1866 = vst.msk [vmem:[#allocation2 + $0xc8] sm:$0xff] %vm3339_vm0, %v1858_v8  ;;  %v2944_v8 = vor.u32 %v3109_v4, %v2943_v0  ;;  %v2841_v0 = vld [vmem:[#allocation2 + $0x18] sm:$0xf0] }
 0x40d   : > { %1796 = vst.msk [vmem:[#allocation2 + $0x78] sm:$0xff] %vm3315_vm7, %v1788_v9 }
 0x40f   : > { %v1874_v10 = vpop.permute.xlu0 %1873  ;;  %v1778_v11 = vpop.permute.xlu1 %1777 }
 0x410   : > { %v1879_v13 = vrot.slane %v1874_v10, 4  ;;  %v1783_v15 = vrot.slane %v1778_v11, 4  ;;  %v1822_v16 = vpop.permute.xlu2 %1821 }
 0x411   : > { %v1829_v17 = vrot.slane %v1822_v16, 4 }
 0x412   : > { %v1883_v14 = vsel %vm654_vm9, %v1874_v10, %v1879_v13  ;;  %v1787_v18 = vsel %vm546_vm6, %v1778_v11, %v1783_v15  ;;  %vm3987_vm6 = vcmask 883712   ;;  %v3093_v35 = vld [vmem:[#allocation2 + $0x64] sm:$0xf0]  ;;  %v2881_v36 = vld [vmem:[#allocation2 + $0x68] sm:$0xf0] }
 0x413   : > { %1891 = vst.msk [vmem:[#allocation2 + $0xf0] sm:$0xff] %vm3323_vm10, %v1883_v14  ;;  %v1833_v19 = vsel %vm600_vm3, %v1822_v16, %v1829_v17  ;;  %v2880_v45 = vor.u32 %v3093_v35, %v2879_v39  ;;  %v2884_v46 = vor.u32 %v3092_v40, %v2881_v36  ;;  %v2935_v10 = vld [vmem:[#allocation2 + $0xd0] sm:$0xf]  ;;  %v3086_v39 = vld [vmem:[#allocation2 + $0x34] sm:$0xf] }
 0x414   : > { %1795 = vst.msk [vmem:[#allocation2 + $0x70] sm:$0xff] %vm3315_vm7, %v1787_v18  ;;  %v3095_v27 = vld [vmem:[#allocation2 + $0x74] sm:$0xf0]  ;;  %v2889_v28 = vld [vmem:[#allocation2 + $0x78] sm:$0xf0]  ;;  %vm3988_vm7 = vmmov %vm3983_vm2 }
 0x415   : > { %1841 = vst.msk [vmem:[#allocation2 + $0xa0] sm:$0xff] %vm3371_vm11, %v1833_v19 }
 0x417   : > { %v1754_v20 = vpop.permute.xlu0 %1753  ;;  %v1826_v21 = vpop.permute.xlu1 %1825 }
 0x418   : > { %v1759_v22 = vrot.slane %v1754_v20, 4  ;;  %v1831_v23 = vrot.slane %v1826_v21, 4  ;;  %v1898_v24 = vpop.permute.xlu2 %1897 }
 0x419   : > { %v1903_v25 = vrot.slane %v1898_v24, 4 }
 0x41a   : > { %v1763_v26 = vsel %vm3986_vm8, %v1754_v20, %v1759_v22  ;;  %v1835_v33 = vsel %vm600_vm3, %v1826_v21, %v1831_v23  ;;  %v2951_v3 = vld [vmem:[#allocation2 + $0xf0] sm:$0xf]  ;;  %v2863_v22 = vld [vmem:[#allocation2 + $0x40] sm:$0xf]  ;;  %v3105_v23 = vld [vmem:[#allocation2 + $0xc4] sm:$0xf0] }
 0x41b   : > { %1771 = vst.msk [vmem:[#allocation2 + $0x50] sm:$0xff] %vm3331_vm13, %v1763_v26  ;;  %v1907_v63 = vsel %vm3987_vm6, %v1898_v24, %v1903_v25  ;;  %v2887_v29 = vld [vmem:[#allocation2 + $0x70] sm:$0xf]  ;;  %v3094_v30 = vld [vmem:[#allocation2 + $0x74] sm:$0xf] }
 0x41c   : > { %1843 = vst.msk [vmem:[#allocation2 + $0xb0] sm:$0xff] %vm3371_vm11, %v1835_v33  ;;  %v2888_v32 = vor.u32 %v3095_v27, %v2887_v29  ;;  %v2892_v34 = vor.u32 %v3094_v30, %v2889_v28  ;;  %v3088_v24 = vld [vmem:[#allocation2 + $0x44] sm:$0xf]  ;;  %v3089_v33 = vld [vmem:[#allocation2 + $0x44] sm:$0xf0] }
 0x41d   : > { %1915 = vst.msk [vmem:[#allocation2 + $0x110] sm:$0xff] %vm3422_vm12, %v1907_v63  ;;  %v2927_v27 = vld [vmem:[#allocation2 + $0xc0] sm:$0xf]  ;;  %v2864_v29 = vor.u32 %v3089_v33, %v2863_v22  ;;  %v2865_v30 = vld [vmem:[#allocation2 + $0x48] sm:$0xf0] }
 0x41e   : > { %2201 = vmatpush.bf16.msrb.mxu2 %v2888_v32  ;;  %2258 = vmatpush.bf16.msra.mxu1 %v2892_v34  ;;  %v2928_v48 = vor.u32 %v3105_v23, %v2927_v27  ;;  %v2868_v32 = vor.u32 %v3088_v24, %v2865_v30  ;;  %v2855_v34 = vld [vmem:[#allocation2 + $0x30] sm:$0xf]  ;;  %v3074_v24 = vld [vmem:[%s3939_s7 + $0x4] sm:$0xf] }
 0x41f   : > { %v1824_v37 = vpop.permute.xlu0 %1823  ;;  %v1876_v38 = vpop.permute.xlu1 %1875  ;;  %v2809_v27 = vld [vmem:[%s3939_s7 + $0xc] sm:$0xf0] }
 0x420   : > { %v1830_v41 = vrot.slane %v1824_v37, 4  ;;  %v1880_v42 = vrot.slane %v1876_v38, 4  ;;  %v1828_v43 = vpop.permute.xlu2 %1827 }
 0x421   : > { %v1832_v47 = vrot.slane %v1828_v43, 4 }
 0x422   : > { %v1834_v49 = vsel %vm600_vm3, %v1824_v37, %v1830_v41  ;;  %v1884_v50 = vsel %vm654_vm9, %v1876_v38, %v1880_v42  ;;  %2202 = vmatpush.bf16.msrb.mxu2 %v2880_v45  ;;  %2259 = vmatpush.bf16.msra.mxu1 %v2884_v46  ;;  %vm3989_vm9 = vmmov %vm3981_vm4  ;;  %v2871_v13 = vld [vmem:[#allocation2 + $0x50] sm:$0xf]  ;;  %v3090_v16 = vld [vmem:[#allocation2 + $0x54] sm:$0xf]  ;;  %vm2323_vm4 = vcmask 662528  }
 0x423   : > { %1842 = vst.msk [vmem:[#allocation2 + $0xa8] sm:$0xff] %vm3371_vm11, %v1834_v49  ;;  %v1836_v51 = vsel %vm600_vm3, %v1828_v43, %v1832_v47  ;;  %v2919_v42 = vld [vmem:[#allocation2 + $0xb0] sm:$0xf]  ;;  %vm3993_vm3 = vmmov %vm3987_vm6 }
 0x424   : > { %1892 = vst.msk [vmem:[#allocation2 + $0xf8] sm:$0xff] %vm3323_vm10, %v1884_v50  ;;  %vm3990_vm10 = vmmov %vm3985_vm1  ;;  %v2967_v22 = vld [vmem:[#allocation2 + $0x110] sm:$0xf]  ;;  %v3114_v23 = vld [vmem:[#allocation2 + $0x114] sm:$0xf] }
 0x425   : > { %1844 = vst.msk [vmem:[#allocation2 + $0xb8] sm:$0xff] %vm3371_vm11, %v1836_v51 }
 0x427   : > { %v1852_v52 = vpop.permute.xlu0 %1851  ;;  %v1756_v53 = vpop.permute.xlu1 %1755 }
 0x428   : > { %v1856_v54 = vrot.slane %v1852_v52, 4  ;;  %v1760_v55 = vrot.slane %v1756_v53, 4  ;;  %v1804_v56 = vpop.permute.xlu2 %1803 }
 0x429   : > { %v1808_v57 = vrot.slane %v1804_v56, 4 }
 0x42a   : > { %v1860_v58 = vsel %vm3988_vm7, %v1852_v52, %v1856_v54  ;;  %v1764_v59 = vsel %vm3989_vm9, %v1756_v53, %v1760_v55  ;;  %v3101_v47 = vld [vmem:[#allocation2 + $0xa4] sm:$0xf0]  ;;  %v2847_v52 = vld [vmem:[#allocation2 + $0x20] sm:$0xf] }
 0x42b   : > { %1868 = vst.msk [vmem:[#allocation2 + $0xd8] sm:$0xff] %vm3339_vm0, %v1860_v58  ;;  %v1812_v60 = vsel %vm573_vm5, %v1804_v56, %v1808_v57  ;;  %v3111_v62 = vld [vmem:[#allocation2 + $0xf4] sm:$0xf0]  ;;  %vm3991_vm0 = vmmov %vm3985_vm1  ;;  %v2911_v53 = vld [vmem:[#allocation2 + $0xa0] sm:$0xf]  ;;  %vm2352_vm1 = vcmask 384000  }
 0x42c   : > { %1772 = vst.msk [vmem:[#allocation2 + $0x58] sm:$0xff] %vm3331_vm13, %v1764_v59  ;;  %v2952_v44 = vor.u32 %v3111_v62, %v2951_v3  ;;  %vm3992_vm13 = vmmov %vm3987_vm6  ;;  %v3103_v35 = vld [vmem:[#allocation2 + $0xb4] sm:$0xf0]  ;;  %v2912_v57 = vor.u32 %v3101_v47, %v2911_v53  ;;  %v3084_v58 = vld [vmem:[#allocation2 + $0x24] sm:$0xf] }
 0x42d   : > { %1820 = vst.msk [vmem:[#allocation2 + $0x98] sm:$0xff] %vm3408_vm15, %v1812_v60  ;;  %v2920_v45 = vor.u32 %v3103_v35, %v2919_v42  ;;  %v3083_v60 = vld [vmem:[#allocation2 + $0x14] sm:$0xf0]  ;;  %v3867_v35 = vor.u32 %v3074_v24, %v2809_v27 }
 0x42e   : > { %2220 = vmatpush.bf16.msrb.mxu3 %v2952_v44  ;;  %v2839_v44 = vld [vmem:[#allocation2 + $0x10] sm:$0xf]  ;;  %v2819_v53 = vld [vmem:[%s3939_s7 + $0x18] sm:$0xf] }
 0x42f   : > { %v1732_v1 = vpop.permute.xlu0 %1731  ;;  %v1728_v2 = vpop.permute.xlu1 %1727  ;;  %v2840_v4 = vor.u32 %v3083_v60, %v2839_v44  ;;  %v2821_v60 = vld [vmem:[%s3939_s7 + $0x24] sm:$0xf0] }
 0x430   : > { %v1736_v5 = vrot.slane %v1732_v1, 4  ;;  %v1734_v6 = vrot.slane %v1728_v2, 4  ;;  %v1896_v12 = vpop.permute.xlu2 %1895 }
 0x431   : > { %v1902_v9 = vrot.slane %v1896_v12, 4 }
 0x432   : > { %v1740_v11 = vsel %vm3990_vm10, %v1732_v1, %v1736_v5  ;;  %v1738_v7 = vsel %vm3991_vm0, %v1728_v2, %v1734_v6  ;;  %2221 = vmatpush.bf16.msrb.mxu3 %v2944_v8  ;;  %v3107_v15 = vld [vmem:[#allocation2 + $0xd4] sm:$0xf0]  ;;  %v3082_v6 = vld [vmem:[#allocation2 + $0x14] sm:$0xf]  ;;  %v3081_v8 = vld [vmem:[#allocation2 + $0x4] sm:$0xf0] }
 0x433   : > { %1748 = vst.msk [vmem:[#allocation2 + $0x38] sm:$0xff] %vm3378_vm14, %v1740_v11  ;;  %v1906_v17 = vsel %vm3992_vm13, %v1896_v12, %v1902_v9  ;;  %v3091_v14 = vld [vmem:[#allocation2 + $0x54] sm:$0xf0]  ;;  %v2936_v18 = vor.u32 %v3107_v15, %v2935_v10  ;;  %v2873_v19 = vld [vmem:[#allocation2 + $0x58] sm:$0xf0]  ;;  %v2844_v12 = vor.u32 %v3082_v6, %v2841_v0 }
 0x434   : > { %1746 = vst.msk [vmem:[#allocation2 + $0x28] sm:$0xff] %vm3378_vm14, %v1738_v7  ;;  %v2872_v20 = vor.u32 %v3091_v14, %v2871_v13  ;;  %v2876_v21 = vor.u32 %v3090_v16, %v2873_v19  ;;  %v3099_v2 = vld [vmem:[#allocation2 + $0x94] sm:$0xf0]  ;;  %v2833_v9 = vld [vmem:[#allocation2 + $0x8] sm:$0xf0] }
 0x435   : > { %1914 = vst.msk [vmem:[#allocation2 + $0x108] sm:$0xff] %vm3422_vm12, %v1906_v17  ;;  %v2953_v10 = vld [vmem:[#allocation2 + $0xf8] sm:$0xf0]  ;;  %v2807_v11 = vld [vmem:[%s3939_s7] sm:$0xf] }
 0x436   : > { %2203 = vmatpush.bf16.msrb.mxu2 %v2872_v20  ;;  %2222 = vmatpush.bf16.msrb.mxu3 %v2936_v18  ;;  %v3075_v7 = vld [vmem:[%s3939_s7 + $0x8] sm:$0xf0]  ;;  %v2831_v13 = vld [vmem:[#allocation2] sm:$0xf]  ;;  %v3080_v15 = vld [vmem:[#allocation2 + $0x4] sm:$0xf] }
 0x437   : > { %2260 = vmatpush.bf16.msra.mxu1 %v2876_v21  ;;  %v1798_v25 = vpop.permute.xlu0 %1797  ;;  %v1802_v26 = vpop.permute.xlu1 %1801  ;;  %v2832_v17 = vor.u32 %v3081_v8, %v2831_v13  ;;  %v3110_v14 = vld [vmem:[#allocation2 + $0xf4] sm:$0xf]  ;;  %v3108_v18 = vld [vmem:[#allocation2 + $0xe4] sm:$0xf]  ;;  %v2836_v19 = vor.u32 %v3080_v15, %v2833_v9  ;;  %v2808_v21 = vor.u32 %v3075_v7, %v2807_v11 }
 0x438   : > { %v1805_v28 = vrot.slane %v1798_v25, 4  ;;  %v1807_v63 = vrot.slane %v1802_v26, 4  ;;  %v2956_v20 = vor.u32 %v3110_v14, %v2953_v10  ;;  %v1978_v27 = vpop.permute.xlu2 %1977 }
 0x43a   : > { %v1809_v36 = vsel %vm573_vm5, %v1798_v25, %v1805_v28  ;;  %v1811_v37 = vsel %vm573_vm5, %v1802_v26, %v1807_v63  ;;  %2204 = vmatpush.bf16.msrb.mxu2 %v2864_v29  ;;  %2223 = vmatpush.bf16.msrb.mxu3 %v2928_v48  ;;  %v3087_v38 = vld [vmem:[#allocation2 + $0x34] sm:$0xf0]  ;;  %v2857_v40 = vld [vmem:[#allocation2 + $0x38] sm:$0xf0] }
 0x43b   : > { %1817 = vst.msk [vmem:[#allocation2 + $0x80] sm:$0xff] %vm3408_vm15, %v1809_v36  ;;  %2261 = vmatpush.bf16.msra.mxu1 %v2868_v32  ;;  %v2856_v41 = vor.u32 %v3087_v38, %v2855_v34  ;;  %v2860_v43 = vor.u32 %v3086_v39, %v2857_v40  ;;  %v3085_v46 = vld [vmem:[#allocation2 + $0x24] sm:$0xf0]  ;;  %v2849_v49 = vld [vmem:[#allocation2 + $0x28] sm:$0xf0] }
 0x43c   : > { %1819 = vst.msk [vmem:[#allocation2 + $0x90] sm:$0xff] %vm3408_vm15, %v1811_v37  ;;  %v2848_v56 = vor.u32 %v3085_v46, %v2847_v52  ;;  %v2852_v59 = vor.u32 %v3084_v58, %v2849_v49  ;;  %v2945_v32 = vld [vmem:[#allocation2 + $0xe8] sm:$0xf0]  ;;  %v2937_v36 = vld [vmem:[#allocation2 + $0xd8] sm:$0xf0] }
 0x43d   : > { %v2948_v34 = vor.u32 %v3108_v18, %v2945_v32  ;;  %v2929_v37 = vld [vmem:[#allocation2 + $0xc8] sm:$0xf0]  ;;  %v2940_v38 = vor.u32 %v3106_v61, %v2937_v36  ;;  %v3113_v39 = vld [vmem:[#allocation2 + $0x104] sm:$0xf0]  ;;  %v3104_v49 = vld [vmem:[#allocation2 + $0xc4] sm:$0xf] }
 0x43e   : > { %2205 = vmatpush.bf16.msrb.mxu2 %v2856_v41  ;;  %2224 = vmatpush.bf16.msrb.mxu3 %v2920_v45  ;;  %v2815_v40 = vld [vmem:[%s3939_s7 + $0x8] sm:$0xf]  ;;  %v3076_v41 = vld [vmem:[%s3939_s7 + $0x10] sm:$0xf0]  ;;  %v2961_v45 = vld [vmem:[#allocation2 + $0x108] sm:$0xf0] }
 0x43f   : > { %2262 = vmatpush.bf16.msra.mxu1 %v2860_v43  ;;  %v1900_v50 = vpop.permute.xlu0 %1899  ;;  %v1800_v51 = vpop.permute.xlu1 %1799  ;;  %v2921_v52 = vld [vmem:[#allocation2 + $0xb8] sm:$0xf0]  ;;  %v2913_v58 = vld [vmem:[#allocation2 + $0xa8] sm:$0xf0] }
 0x440   : > { %v1904_v54 = vrot.slane %v1900_v50, 4  ;;  %v1806_v55 = vrot.slane %v1800_v51, 4 }
 0x442   : > { %v1908_v3 = vsel %vm3993_vm3, %v1900_v50, %v1904_v54  ;;  %v1810_v62 = vsel %vm573_vm5, %v1800_v51, %v1806_v55  ;;  %2206 = vmatpush.bf16.msrb.mxu2 %v2848_v56  ;;  %2225 = vmatpush.bf16.msrb.mxu3 %v2912_v57  ;;  %v2895_v28 = vld [vmem:[#allocation2 + $0x80] sm:$0xf]  ;;  %v2816_v50 = vor.u32 %v3076_v41, %v2815_v40  ;;  %v3078_v54 = vld [vmem:[%s3939_s7 + $0x20] sm:$0xf0]  ;;  %v3102_v55 = vld [vmem:[#allocation2 + $0xb4] sm:$0xf] }
 0x443   : > { %1916 = vst.msk [vmem:[#allocation2 + $0x118] sm:$0xff] %vm3422_vm12, %v1908_v3  ;;  %2263 = vmatpush.bf16.msra.mxu1 %v2852_v59  ;;  %v2903_v1 = vld [vmem:[#allocation2 + $0x90] sm:$0xf]  ;;  %v2932_v51 = vor.u32 %v3104_v49, %v2929_v37  ;;  %v2924_v56 = vor.u32 %v3102_v55, %v2921_v52  ;;  %v2820_v57 = vor.u32 %v3078_v54, %v2819_v53  ;;  %v3077_v59 = vld [vmem:[%s3939_s7 + $0x1c] sm:$0xf] }
 0x444   : > { %1818 = vst.msk [vmem:[#allocation2 + $0x88] sm:$0xff] %vm3408_vm15, %v1810_v62  ;;  %v2904_v5 = vor.u32 %v3099_v2, %v2903_v1  ;;  %vm3994_vm15 = vmmov %vm3993_vm3  ;;  %v3100_v3 = vld [vmem:[#allocation2 + $0xa4] sm:$0xf]  ;;  %v2824_v44 = vor.u32 %v3077_v59, %v2821_v60  ;;  %v3098_v0 = vld [vmem:[#allocation2 + $0x94] sm:$0xf] }
 0x445   : > { %v2916_v62 = vor.u32 %v3100_v3, %v2913_v58  ;;  %v2905_v1 = vld [vmem:[#allocation2 + $0x98] sm:$0xf0] }
 0x446   : > { %2207 = vmatpush.bf16.msrb.mxu2 %v2840_v4  ;;  %2226 = vmatpush.bf16.msrb.mxu3 %v2904_v5  ;;  %v2908_v2 = vor.u32 %v3098_v0, %v2905_v1  ;;  %v2827_v4 = vld [vmem:[%s3939_s7 + $0x20] sm:$0xf]  ;;  %v3079_v5 = vld [vmem:[%s3939_s7 + $0x28] sm:$0xf0] }
 0x447   : > { %2264 = vmatpush.bf16.msra.mxu1 %v2844_v12  ;;  %v1894_v31 = vpop.permute.xlu1 %1893  ;;  %v3096_v12 = vld [vmem:[#allocation2 + $0x84] sm:$0xf]  ;;  %v2828_v8 = vor.u32 %v3079_v5, %v2827_v4  ;;  %v1968_v7 = vpop.permute.xlu0 %1967 }
 0x448   : > { %v1901_v16 = vrot.slane %v1894_v31, 4 }
 0x44a   : > { %v1905_v25 = vsel %vm3994_vm15, %v1894_v31, %v1901_v16  ;;  %2208 = vmatpush.bf16.msrb.mxu2 %v2832_v17  ;;  %v3115_v26 = vld [vmem:[#allocation2 + $0x114] sm:$0xf0]  ;;  %v2969_v33 = vld [vmem:[#allocation2 + $0x118] sm:$0xf0] }
 0x44b   : > { %1913 = vst.msk [vmem:[#allocation2 + $0x100] sm:$0xff] %vm3422_vm12, %v1905_v25  ;;  %2265 = vmatpush.bf16.msra.mxu1 %v2836_v19  ;;  %v3097_v63 = vld [vmem:[#allocation2 + $0x84] sm:$0xf0]  ;;  %v2968_v29 = vor.u32 %v3115_v26, %v2967_v22  ;;  %v2972_v48 = vor.u32 %v3114_v23, %v2969_v33  ;;  %vm3995_vm12 = vcmask 261120   ;;  %v2897_v6 = vld [vmem:[#allocation2 + $0x88] sm:$0xf0] }
 0x44c   : > { %v2896_v30 = vor.u32 %v3097_v63, %v2895_v28  ;;  %v2900_v9 = vor.u32 %v3096_v12, %v2897_v6  ;;  %vm3996_vm11 = vmmov %vm3995_vm12 }
 0x44d   : > { %2209 = vmatmul.bf16.vlgmr.msrb.gmra.mxu2 %v2808_v21  ;;  %2245 = vmatpush.bf16.msra.mxu0 %v2968_v29  ;;  %vm3997_vm14 = vmmov %vm3996_vm11 }
 0x44e   : > { %3116 = vmatpush.bf16.msra.mxu2 %v2956_v20  ;;  %2266 = vmatmul.bf16.vlgmr.msra.gmra.mxu1 %v2808_v21  ;;  %vm3998_vm5 = vmmov %vm3996_vm11 }
 0x44f   : > { %2227 = vmatpush.bf16.msrb.mxu3 %v2896_v30  ;;  %2302 = vmatpush.bf16.msrb.mxu1 %v2972_v48  ;;  %v1983_v36 = vpop.permute.xlu0 %1982 }
 0x452   : > { %3117 = vmatpush.bf16.msra.mxu2 %v2948_v34  ;;  %2228 = vmatmul.bf16.vlgmr.msrb.gmra.mxu3 %v3867_v35  ;;  %v2959_v42 = vld [vmem:[#allocation2 + $0x100] sm:$0xf]  ;;  %v3112_v43 = vld [vmem:[#allocation2 + $0x104] sm:$0xf] }
 0x453   : > { %3124 = vmatpush.bf16.msra.mxu3 %v2972_v48  ;;  %v2960_v46 = vor.u32 %v3113_v39, %v2959_v42  ;;  %v2964_v47 = vor.u32 %v3112_v43, %v2961_v45 }
 0x455   : > { %2246 = vmatpush.bf16.msra.mxu0 %v2960_v46  ;;  %2303 = vmatpush.bf16.msrb.mxu1 %v2964_v47 }
 0x456   : > { %3118 = vmatpush.bf16.msra.mxu2 %v2940_v38 }
 0x457   : > { %3125 = vmatpush.bf16.msra.mxu3 %v2964_v47 }
 0x458   : > { %2973 = vmatmul.msk.bf16.vlgmr.msra.gmra.mxu0 %vm3995_vm12, %v2816_v50 }
 0x459   : > { %2277 = vmatpush.bf16.msrb.mxu0 %v2956_v20  ;;  %v1973_v20 = vpop.permute.xlu1 %1972 }
 0x45a   : > { %3119 = vmatpush.bf16.msra.mxu2 %v2932_v51 }
 0x45d   : > { %2278 = vmatpush.bf16.msrb.mxu0 %v2948_v34  ;;  %2214 = vmatmul.bf16.gmra.mxu2 %v2820_v57 }
 0x45e   : > { %3120 = vmatpush.bf16.msra.mxu2 %v2924_v56  ;;  %2271 = vmatmul.bf16.gmra.mxu1 %v2820_v57 }
 0x461   : > { %2279 = vmatpush.bf16.msrb.mxu0 %v2940_v38 }
 0x462   : > { %3121 = vmatpush.bf16.msra.mxu2 %v2916_v62  ;;  %2233 = vmatmul.bf16.gmra.mxu3 %v2824_v44 }
 0x465   : > { %2280 = vmatpush.bf16.msrb.mxu0 %v2932_v51 }
 0x466   : > { %3122 = vmatpush.bf16.msra.mxu2 %v2908_v2 }
 0x468   : > { %2974 = vmatmul.msk.bf16.gmra.mxu0 %vm3996_vm11, %v2828_v8 }
 0x469   : > { %2281 = vmatpush.bf16.msrb.mxu0 %v2924_v56 }
 0x46a   : > { %3123 = vmatpush.bf16.msra.mxu2 %v2900_v9 }
 0x46d   : > { %2282 = vmatpush.bf16.msrb.mxu0 %v2916_v62  ;;  %2290 = vmatmul.bf16.vlgmr.msra.gmra.mxu2 %v2824_v44 }
 0x46e   : > { %2975 = vmatmul.msk.bf16.vlgmr.msrb.gmra.mxu1 %vm3997_vm14, %v2816_v50 }
 0x471   : > { %2283 = vmatpush.bf16.msrb.mxu0 %v2908_v2 }
 0x472   : > { %2976 = vmatmul.msk.bf16.vlgmr.msra.gmra.mxu3 %vm3998_vm5, %v2828_v8 }
 0x475   : > { %2284 = vmatpush.bf16.msrb.mxu0 %v2900_v9 }
 0x478   : > { %2285 = vmatmul.bf16.vlgmr.msrb.gmra.mxu0 %v3867_v35 }
 0x4cb   : > { %v2267_v10 = vpop.f32.mrf.mxu1 }
 0x4cc   : > { %v2268_v47 = vadd.f32 %v2267_v10, %v1968_v7 }
 0x4d0   : > { %v2210_v11 = vpop.f32.mrf.mxu2 }
 0x4d1   : > { %v2211_v31 = vadd.f32 %v2210_v11, %v1968_v7 }
 0x4d3   : > { %v2269_v18 = vpop.f32.mrf.mxu1 }
 0x4d4   : > { %v2270_v59 = vadd.f32 %v2269_v18, %v1973_v20 }
 0x4d5   : > { %v2229_v13 = vpop.f32.mrf.mxu3  ;;  %v2248_v16 = vpop.f32.mrf.mxu0 }
 0x4d6   : > { %v2230_v15 = vadd.f32 %v2229_v13, %v2211_v31 }
 0x4d8   : > { %v2249_v17 = vadd.f32 %v2248_v16, %v2230_v15  ;;  %v2212_v14 = vpop.f32.mrf.mxu2 }
 0x4d9   : > { %v2213_v21 = vadd.f32 %v2212_v14, %v1973_v20 }
 0x4da   : > { %v2315_v19 = vmax.f32 %v2249_v17, 0.0 }
 0x4db   : > { %v2272_v28 = vpop.f32.mrf.mxu1 }
 0x4dc   : > { %2324 = vst.msk [vmem:[%s3903_s24] sm:$0xff] %vm2323_vm4, %v2315_v19  ;;  %2336 = vrot.lane.b32.xlu1 %v2315_v19, %s3165_s10  ;;  %v2273_v43 = vadd.f32 %v2272_v28, %v1978_v27 }
 0x4dd   : > { %v2231_v22 = vpop.f32.mrf.mxu3  ;;  %v2250_v24 = vpop.f32.mrf.mxu0 }
 0x4de   : > { %v2232_v23 = vadd.f32 %v2231_v22, %v2213_v21 }
 0x4e0   : > { %v2251_v25 = vadd.f32 %v2250_v24, %v2232_v23  ;;  %v2215_v26 = vpop.f32.mrf.mxu2 }
 0x4e1   : > { %v2216_v63 = vadd.f32 %v2215_v26, %v1978_v27 }
 0x4e2   : > { %v2317_v33 = vmax.f32 %v2251_v25, 0.0 }
 0x4e3   : > { %v2274_v38 = vpop.f32.mrf.mxu1 }
 0x4e4   : > { %2325 = vst.msk [vmem:[%s3903_s24 + $0x8] sm:$0xff] %vm2323_vm4, %v2317_v33  ;;  %2340 = vrot.lane.b32.xlu0 %v2317_v33, %s3165_s10  ;;  %v2275_v57 = vadd.f32 %v2274_v38, %v1983_v36 }
 0x4e5   : > { %v2234_v29 = vpop.f32.mrf.mxu3  ;;  %v2253_v30 = vpop.f32.mrf.mxu0 }
 0x4e6   : > { %v2235_v48 = vadd.f32 %v2234_v29, %v2216_v63 }
 0x4e8   : > { %v2254_v32 = vadd.f32 %v2253_v30, %v2235_v48  ;;  %v2217_v34 = vpop.f32.mrf.mxu2 }
 0x4e9   : > { %v2218_v61 = vadd.f32 %v2217_v34, %v1983_v36 }
 0x4ea   : > { %v2319_v35 = vmax.f32 %v2254_v32, 0.0 }
 0x4eb   : > { %v2305_v52 = vpop.f32.mrf.mxu1 }
 0x4ec   : > { %2326 = vst.msk [vmem:[%s3903_s24 + $0x10] sm:$0xff] %vm2323_vm4, %v2319_v35  ;;  %2344 = vrot.lane.b32.xlu2 %v2319_v35, %s3165_s10 }
 0x4ed   : > { %v2236_v37 = vpop.f32.mrf.mxu3  ;;  %v2255_v40 = vpop.f32.mrf.mxu0 }
 0x4ee   : > { %v2237_v39 = vadd.f32 %v2236_v37, %v2218_v61 }
 0x4f0   : > { %v2256_v41 = vadd.f32 %v2255_v40, %v2237_v39  ;;  %v2291_v42 = vpop.f32.mrf.mxu2 }
 0x4f1   : > { %v2292_v46 = vadd.f32 %v2291_v42, %v2273_v43 }
 0x4f2   : > { %v2321_v45 = vmax.f32 %v2256_v41, 0.0 }
 0x4f3   : > { %v2307_v1 = vpop.f32.mrf.mxu1 }
 0x4f4   : > { %2327 = vst.msk [vmem:[%s3903_s24 + $0x18] sm:$0xff] %vm2323_vm4, %v2321_v45 }
 0x4f5   : > { %v2310_v49 = vpop.f32.mrf.mxu3  ;;  %v2286_v51 = vpop.f32.mrf.mxu0 }
 0x4f6   : > { %v2311_v50 = vadd.f32 %v2310_v49, %v2292_v46  ;;  %v2287_v53 = vadd.f32 %v2286_v51, %v2268_v47 }
 0x4f8   : > { %v2320_v54 = vmax.f32 %v2311_v50, 0.0  ;;  %v2306_v55 = vadd.f32 %v2305_v52, %v2287_v53  ;;  %v2293_v56 = vpop.f32.mrf.mxu2 }
 0x4f9   : > { %v2294_v60 = vadd.f32 %v2293_v56, %v2275_v57 }
 0x4fa   : > { %2346 = vrot.lane.b32.xlu0 %v2320_v54, %s3165_s10  ;;  %v2316_v58 = vmax.f32 %v2306_v55, 0.0 }
 0x4fc   : > { %2338 = vrot.lane.b32.xlu2 %v2316_v58, %s3165_s10 }
 0x4fd   : > { %v2312_v3 = vpop.f32.mrf.mxu3  ;;  %v2288_v62 = vpop.f32.mrf.mxu0 }
 0x4fe   : > { %v2313_v44 = vadd.f32 %v2312_v3, %v2294_v60  ;;  %v2289_v0 = vadd.f32 %v2288_v62, %v2270_v59 }
 0x500   : > { %v2308_v2 = vadd.f32 %v2307_v1, %v2289_v0  ;;  %v2322_v4 = vmax.f32 %v2313_v44, 0.0 }
 0x502   : > { %v2318_v5 = vmax.f32 %v2308_v2, 0.0 }
 0x504   : > { %2342 = vrot.lane.b32.xlu1 %v2318_v5, %s3165_s10  ;;  %2350 = vrot.lane.b32.xlu2 %v2322_v4, %s3165_s10 }
 0x50c   : > { %2348 = vrot.lane.b32.xlu1 %v2321_v45, %s3165_s10 }
 0x546   : > { %v2345_v6 = vpop.permute.xlu2 %2344 }
 0x54e   : > { %v2337_v12 = vpop.permute.xlu1 %2336 }
 0x556   : > { %v2339_v8 = vpop.permute.xlu2 %2338  ;;  %v2341_v10 = vpop.permute.xlu0 %2340 }
 0x557   : > { %v2353_v9 = vsel %vm2352_vm1, %v2337_v12, %v2339_v8 }
 0x558   : > { %2977 = vst.msk [vmem:[%s3903_s24 + $0x20] sm:$0xff] %vm2323_vm4, %v2353_v9 }
 0x55e   : > { %v2351_v15 = vpop.permute.xlu2 %2350 }
 0x56c   : > { %v2347_v11 = vpop.permute.xlu0 %2346 }
 0x56d   : > { %v2355_v7 = vsel %vm2352_vm1, %v2345_v6, %v2347_v11 }
 0x56e   : > { %2979 = vst.msk [vmem:[%s3903_s24 + $0x30] sm:$0xff] %vm2323_vm4, %v2355_v7 }
 0x576   : > { %v2343_v31 = vpop.permute.xlu1 %2342 }
 0x577   : > { %v2354_v13 = vsel %vm2352_vm1, %v2341_v10, %v2343_v31 }
 0x578   : > { %2978 = vst.msk [vmem:[%s3903_s24 + $0x28] sm:$0xff] %vm2323_vm4, %v2354_v13 }
 0x57e   : > { %v2349_v16 = vpop.permute.xlu1 %2348 }
 0x57f   : > { %v2356_v17 = vsel %vm2352_vm1, %v2349_v16, %v2351_v15 }
 0x580   : > { %2980 = vst.msk [vmem:[%s3903_s24 + $0x38] sm:$0xff] %vm2323_vm4, %v2356_v17 }
 0x581 PF: > { %s19_s30 = sadd.s32 1, %s3154_s30  }
 0x582   : > { %p16_p5 = scmp.ge.s32.totalorder %s19_s30, 4  }
 0x584   :  { %18 = sbr.rel (!%p16_p5) target bundleno = 1 (0x1), region = 87 }

</bundles_post_ra>
